<compile_context>
chip_gen: v5e
topology: v5e:2x2
jax: 0.10.0
libtpu: 0.0.40
codegen_flags: <defaults>
</compile_context>

<pallas_src>
import jax
import jax.numpy as jnp
from jax.experimental import pallas as pl
from jax.experimental.pallas import tpu as pltpu


def _round_up(n, m):
    return (n + m - 1) // m * m


def head_kernel(x_ref, feat_ref, w1x_ref, w1f_ref, b1_ref, w2_ref, b2_ref,
                out_ref, acc_ref):
    # x_ref    : (TB, HW_TILE, C)  backbone features (bf16 or f32), one HW chunk
    # feat_ref : (TB, F_pad)       additional features (zero lane-padded)
    # w1x_ref  : (C, 512)    bf16  fc1 rows for pooled channels, pre-scaled 1/(H*W)
    # w1f_ref  : (F_pad, 512) bf16 fc1 rows for the extra features (zero row-padded)
    # b1_ref   : (1, 512)    f32
    # w2_ref   : (512, N_pad) bf16 fc2 weight, lane-padded to a multiple of 128
    # b2_ref   : (1, N_pad)  f32
    # out_ref  : (TB, N_pad) f32
    # acc_ref  : (TB, C)     f32 pooled-sum accumulator (VMEM scratch)
    k = pl.program_id(1)

    @pl.when(k == 0)
    def _():
        acc_ref[...] = jnp.zeros_like(acc_ref)

    # permute(0,3,1,2) + AdaptiveAvgPool2d(1) + flatten == mean over H*W.
    # Fused cast+reduce: accumulate this HW chunk's sum in f32 without
    # materializing an f32 copy of the (TB, HW_TILE, C) block.  The 1/(H*W)
    # scale is folded into w1x, so a raw sum suffices.
    acc_ref[...] += jnp.sum(x_ref[...], axis=1, dtype=jnp.float32)

    @pl.when(k == pl.num_programs(1) - 1)
    def _():
        # cat((pooled, features), dim=1) @ W1 + b1 == split matmul (bf16 MXU).
        pooled = acc_ref[...].astype(jnp.bfloat16)          # (TB, C)
        feat = feat_ref[...].astype(jnp.bfloat16)           # (TB, F_pad)
        h = (jnp.dot(pooled, w1x_ref[...], preferred_element_type=jnp.float32)
             + jnp.dot(feat, w1f_ref[...], preferred_element_type=jnp.float32)
             + b1_ref[...])
        h = jnp.maximum(h, 0.0).astype(jnp.bfloat16)        # ReLU
        out = (jnp.dot(h, w2_ref[...], preferred_element_type=jnp.float32)
               + b2_ref[...])
        out_ref[...] = out.astype(out_ref.dtype)


def vssm_with_features_head(x, features, w1x, w1f, b1, w2, b2, *,
                            block_b=256, block_hw=None):
    """NHWC backbone output + extra features -> logits (avgpool + fc1 + ReLU + fc2)."""
    B, H, W, C = x.shape
    HW = H * W
    F_add = features.shape[1]
    hidden = w2.shape[0]
    num_classes = w2.shape[1]

    # (B, H, W, C) -> (B, H*W, C): dense (8,128) tiles, one-axis reduction.
    x2 = x.reshape(B, HW, C)

    # Fold the average-pool 1/(H*W) into fc1's x-rows (trace time); bf16 weights.
    w1x_s = (w1x.astype(jnp.float32) * (1.0 / HW)).astype(jnp.bfloat16)
    b1_f = b1.astype(jnp.float32).reshape(1, hidden)

    # Lane-pad the feature dim to 128: one unmasked MXU pass, no masked vregs.
    f_pad = _round_up(max(F_add, 1), 128)
    feat_p = jnp.pad(features.astype(jnp.float32), ((0, 0), (0, f_pad - F_add)))
    w1f_p = jnp.pad(w1f.astype(jnp.float32),
                    ((0, f_pad - F_add), (0, 0))).astype(jnp.bfloat16)

    # Lane-pad the narrow class dim to 128 to avoid masked partial stores.
    n_pad = _round_up(num_classes, 128)
    w2_p = jnp.pad(w2.astype(jnp.float32),
                   ((0, 0), (0, n_pad - num_classes))).astype(jnp.bfloat16)
    b2_p = jnp.pad(b2.astype(jnp.float32).reshape(1, num_classes),
                   ((0, 0), (0, n_pad - num_classes)))

    # Batch tile: sublane-aligned, >=2 tiles when B allows (v7x megacore sharding
    # over the "parallel" axis), capped at block_b.
    tb = min(block_b, _round_up(max(1, -(-B // 2)), 8), _round_up(B, 8))
    b_pad = _round_up(B, tb)

    # HW reduction tile: keep the double-buffered x block a few MiB so it fits
    # the scoped VMEM defaults on every generation (v7x has only 64 MiB total)
    # while still giving multiple pipelined grid steps.  Zero-padded HW rows do
    # not change the pooled sum (the 1/HW fold above uses the true HW).
    hw_unit = 8
    if block_hw is None:
        budget = 4 * 1024 * 1024
        rows = max(hw_unit, budget // max(1, tb * C * x2.dtype.itemsize))
        block_hw = max(hw_unit, rows // hw_unit * hw_unit)
    block_hw = max(hw_unit, block_hw // hw_unit * hw_unit)
    block_hw = min(block_hw, _round_up(HW, hw_unit))
    hw_pad = _round_up(HW, block_hw)

    if b_pad != B or hw_pad != HW:
        x2 = jnp.pad(x2, ((0, b_pad - B), (0, hw_pad - HW), (0, 0)))
    if b_pad != B:
        feat_p = jnp.pad(feat_p, ((0, b_pad - B), (0, 0)))

    grid = (b_pad // tb, hw_pad // block_hw)

    cost = pl.CostEstimate(
        flops=2 * b_pad * (hw_pad * C + C * hidden + f_pad * hidden
                           + hidden * n_pad),
        transcendentals=0,
        bytes_accessed=(x2.size * x2.dtype.itemsize
                        + feat_p.size * feat_p.dtype.itemsize
                        + w1x_s.size * 2 + w1f_p.size * 2 + w2_p.size * 2
                        + (b1_f.size + b2_p.size) * 4
                        + b_pad * n_pad * 4),
    )

    out = pl.pallas_call(
        head_kernel,
        out_shape=jax.ShapeDtypeStruct((b_pad, n_pad), jnp.float32),
        grid=grid,
        in_specs=[
            pl.BlockSpec((tb, block_hw, C), lambda i, k: (i, k, 0)),  # x: streamed
            pl.BlockSpec((tb, f_pad), lambda i, k: (i, 0)),           # features
            pl.BlockSpec((C, hidden), lambda i, k: (0, 0)),           # w1x (resident)
            pl.BlockSpec((f_pad, hidden), lambda i, k: (0, 0)),       # w1f (resident)
            pl.BlockSpec((1, hidden), lambda i, k: (0, 0)),           # b1  (resident)
            pl.BlockSpec((hidden, n_pad), lambda i, k: (0, 0)),       # w2  (resident)
            pl.BlockSpec((1, n_pad), lambda i, k: (0, 0)),            # b2  (resident)
        ],
        out_specs=pl.BlockSpec((tb, n_pad), lambda i, k: (i, 0)),
        scratch_shapes=[pltpu.VMEM((tb, C), jnp.float32)],            # pooled acc
        compiler_params=pltpu.CompilerParams(
            dimension_semantics=("parallel", "arbitrary")),
        cost_estimate=cost,
    )(x2, feat_p, w1x_s, w1f_p, b1_f, w2_p, b2_p)

    return out[:B, :num_classes]


def reference_head(x, features, w1x, w1f, b1, w2, b2):
    pooled = jnp.mean(x.astype(jnp.float32), axis=(1, 2))
    cat = jnp.concatenate([pooled, features.astype(jnp.float32)], axis=1)
    w1 = jnp.concatenate([w1x, w1f], axis=0).astype(jnp.float32)
    h = jax.nn.relu(cat @ w1 + b1.astype(jnp.float32).reshape(1, -1))
    return h @ w2.astype(jnp.float32) + b2.astype(jnp.float32).reshape(1, -1)


if __name__ == "__main__":
    key = jax.random.PRNGKey(0)
    B, H, W, C = 2, 4, 4, 768          # backbone output (VSSM final dim = 768)
    F_ADD = 16                          # num_additional_features
    NUM_CLASSES = 10
    HIDDEN = 512

    k = jax.random.split(key, 7)
    # Stream x as bf16 through the DMA (halves the dominant HBM traffic);
    # the pooling accumulates in f32 inside the kernel.
    x = jax.random.normal(k[0], (B, H, W, C), dtype=jnp.float32).astype(jnp.bfloat16)
    features = jax.random.normal(k[1], (B, F_ADD), dtype=jnp.float32)

    # fc1: in = 768 + F_ADD -> 512, fc2: 512 -> classes
    w1_full = jax.random.normal(k[2], (C + F_ADD, HIDDEN), dtype=jnp.float32) * 0.02
    w1x = w1_full[:C, :]
    w1f = w1_full[C:, :]
    b1 = jax.random.normal(k[3], (1, HIDDEN), dtype=jnp.float32) * 0.02
    w2 = jax.random.normal(k[4], (HIDDEN, NUM_CLASSES), dtype=jnp.float32) * 0.02
    b2 = jax.random.normal(k[5], (1, NUM_CLASSES), dtype=jnp.float32) * 0.02

    # block_hw=8 forces 2 HW grid steps at this small shape, exercising the
    # accumulator init/accumulate/finalize path.
    out = vssm_with_features_head(x, features, w1x, w1f, b1, w2, b2, block_hw=8)
    out = jax.block_until_ready(out)

    ref = reference_head(x, features, w1x, w1f, b1, w2, b2)
    assert out.shape == (B, NUM_CLASSES)
    # bf16 weights / bf16 MXU LHS with f32 accumulation -> slightly looser tol.
    assert jnp.allclose(out, ref, atol=3e-3, rtol=3e-3), "mismatch vs JAX reference"

    print("KERNEL_OK")
</pallas_src>

<mosaic_0001>
module attributes {stable_mosaic.version = 11 : i64} {
  func.func @head_kernel(%arg0: i32, %arg1: i32, %arg2: memref<8x8x768xbf16, #tpu.memory_space<vmem>>, %arg3: memref<8x128xf32, #tpu.memory_space<vmem>>, %arg4: memref<768x512xbf16, #tpu.memory_space<vmem>>, %arg5: memref<128x512xbf16, #tpu.memory_space<vmem>>, %arg6: memref<1x512xf32, #tpu.memory_space<vmem>>, %arg7: memref<512x128xbf16, #tpu.memory_space<vmem>>, %arg8: memref<1x128xf32, #tpu.memory_space<vmem>>, %arg9: memref<8x128xf32, #tpu.memory_space<vmem>>, %arg10: memref<8x768xf32, #tpu.memory_space<vmem>>) attributes {dimension_semantics = [#tpu.dimension_semantics<parallel>, #tpu.dimension_semantics<arbitrary>], iteration_bounds = array<i64: 1, 2>, scalar_prefetch = 0 : i64, scratch_operands = 1 : i64, tpu.core_type = #tpu.core_type<tc>, window_params = [{transform_indices = @transform_0, window_bounds = array<i64: 8, 8, 768>}, {transform_indices = @transform_1, window_bounds = array<i64: 8, 128>}, {pipeline_mode = #tpu.pipeline_mode<synchronous>, transform_indices = @transform_2, window_bounds = array<i64: 768, 512>}, {pipeline_mode = #tpu.pipeline_mode<synchronous>, transform_indices = @transform_3, window_bounds = array<i64: 128, 512>}, {pipeline_mode = #tpu.pipeline_mode<synchronous>, transform_indices = @transform_4, window_bounds = array<i64: 1, 512>}, {pipeline_mode = #tpu.pipeline_mode<synchronous>, transform_indices = @transform_5, window_bounds = array<i64: 512, 128>}, {pipeline_mode = #tpu.pipeline_mode<synchronous>, transform_indices = @transform_6, window_bounds = array<i64: 1, 128>}, {transform_indices = @transform_7, window_bounds = array<i64: 8, 128>}]} {
    %c0_i32 = arith.constant 0 : i32
    %0 = arith.cmpi eq, %arg1, %c0_i32 : i32
    %1 = arith.extui %0 : i1 to i32
    %c0_i32_0 = arith.constant 0 : i32
    %2 = arith.cmpi ne, %1, %c0_i32_0 : i32
    scf.if %2 {
      %cst_8 = arith.constant 0.000000e+00 : f32
      %12 = vector.broadcast %cst_8 : f32 to vector<8x768xf32>
      %c0_9 = arith.constant 0 : index
      %c0_10 = arith.constant 0 : index
      %13 = vector.load %arg10[%c0_9, %c0_10] : memref<8x768xf32, #tpu.memory_space<vmem>>, vector<8x768xf32>
      tpu.vector_store %arg10[%c0_9, %c0_10], %12 {strides = array<i32>} : memref<8x768xf32, #tpu.memory_space<vmem>>, vector<8x768xf32>,
    } else {
    }
    %c0 = arith.constant 0 : index
    %c0_1 = arith.constant 0 : index
    %3 = vector.load %arg10[%c0, %c0_1] : memref<8x768xf32, #tpu.memory_space<vmem>>, vector<8x768xf32>
    %c0_2 = arith.constant 0 : index
    %c0_3 = arith.constant 0 : index
    %c0_4 = arith.constant 0 : index
    %4 = vector.load %arg2[%c0_2, %c0_3, %c0_4] : memref<8x8x768xbf16, #tpu.memory_space<vmem>>, vector<8x8x768xbf16>
    %5 = arith.extf %4 : vector<8x8x768xbf16> to vector<8x8x768xf32>
    %cst = arith.constant dense<0.000000e+00> : vector<8x768xf32>
    %6 = vector.multi_reduction <add>, %5, %cst [1] : vector<8x8x768xf32> to vector<8x768xf32>
    %7 = arith.addf %3, %6 : vector<8x768xf32>
    %c0_5 = arith.constant 0 : index
    %c0_6 = arith.constant 0 : index
    %8 = vector.load %arg10[%c0_5, %c0_6] : memref<8x768xf32, #tpu.memory_space<vmem>>, vector<8x768xf32>
    tpu.vector_store %arg10[%c0_5, %c0_6], %7 {strides = array<i32>} : memref<8x768xf32, #tpu.memory_space<vmem>>, vector<8x768xf32>,
    %c1_i32 = arith.constant 1 : i32
    %9 = arith.cmpi eq, %arg1, %c1_i32 : i32
    %10 = arith.extui %9 : i1 to i32
    %c0_i32_7 = arith.constant 0 : i32
    %11 = arith.cmpi ne, %10, %c0_i32_7 : i32
    scf.if %11 {
      %c0_8 = arith.constant 0 : index
      %c0_9 = arith.constant 0 : index
      %12 = vector.load %arg10[%c0_8, %c0_9] : memref<8x768xf32, #tpu.memory_space<vmem>>, vector<8x768xf32>
      %13 = arith.truncf %12 : vector<8x768xf32> to vector<8x768xbf16>
      %c0_10 = arith.constant 0 : index
      %c0_11 = arith.constant 0 : index
      %14 = vector.load %arg3[%c0_10, %c0_11] : memref<8x128xf32, #tpu.memory_space<vmem>>, vector<8x128xf32>
      %15 = arith.truncf %14 : vector<8x128xf32> to vector<8x128xbf16>
      %c0_12 = arith.constant 0 : index
      %c0_13 = arith.constant 0 : index
      %16 = vector.load %arg4[%c0_12, %c0_13] : memref<768x512xbf16, #tpu.memory_space<vmem>>, vector<768x512xbf16>
      %cst_14 = arith.constant dense<0.000000e+00> : vector<8x512xf32>
      %17 = tpu.matmul %13, %16, %cst_14 {dimension_numbers = #tpu.dot_dimension_numbers<[1], [0], [0], [1], [0, 0, 1, 1], [], []>} : vector<8x768xbf16>, vector<768x512xbf16>, vector<8x512xf32> -> vector<8x512xf32>
      %c0_15 = arith.constant 0 : index
      %c0_16 = arith.constant 0 : index
      %18 = vector.load %arg5[%c0_15, %c0_16] : memref<128x512xbf16, #tpu.memory_space<vmem>>, vector<128x512xbf16>
      %cst_17 = arith.constant dense<0.000000e+00> : vector<8x512xf32>
      %19 = tpu.matmul %15, %18, %cst_17 {dimension_numbers = #tpu.dot_dimension_numbers<[1], [0], [0], [1], [0, 0, 1, 1], [], []>} : vector<8x128xbf16>, vector<128x512xbf16>, vector<8x512xf32> -> vector<8x512xf32>
      %20 = arith.addf %17, %19 : vector<8x512xf32>
      %c0_18 = arith.constant 0 : index
      %c0_19 = arith.constant 0 : index
      %21 = vector.load %arg6[%c0_18, %c0_19] : memref<1x512xf32, #tpu.memory_space<vmem>>, vector<1x512xf32>
      %22 = vector.broadcast %21 : vector<1x512xf32> to vector<8x512xf32>
      %23 = arith.addf %20, %22 : vector<8x512xf32>
      %cst_20 = arith.constant 0.000000e+00 : f32
      %24 = vector.broadcast %cst_20 : f32 to vector<8x512xf32>
      %25 = arith.maximumf %23, %24 : vector<8x512xf32>
      %26 = arith.truncf %25 : vector<8x512xf32> to vector<8x512xbf16>
      %c0_21 = arith.constant 0 : index
      %c0_22 = arith.constant 0 : index
      %27 = vector.load %arg7[%c0_21, %c0_22] : memref<512x128xbf16, #tpu.memory_space<vmem>>, vector<512x128xbf16>
      %cst_23 = arith.constant dense<0.000000e+00> : vector<8x128xf32>
      %28 = tpu.matmul %26, %27, %cst_23 {dimension_numbers = #tpu.dot_dimension_numbers<[1], [0], [0], [1], [0, 0, 1, 1], [], []>} : vector<8x512xbf16>, vector<512x128xbf16>, vector<8x128xf32> -> vector<8x128xf32>
      %c0_24 = arith.constant 0 : index
      %c0_25 = arith.constant 0 : index
      %29 = vector.load %arg8[%c0_24, %c0_25] : memref<1x128xf32, #tpu.memory_space<vmem>>, vector<1x128xf32>
      %30 = vector.broadcast %29 : vector<1x128xf32> to vector<8x128xf32>
      %31 = arith.addf %28, %30 : vector<8x128xf32>
      %c0_26 = arith.constant 0 : index
      %c0_27 = arith.constant 0 : index
      %32 = vector.load %arg9[%c0_26, %c0_27] : memref<8x128xf32, #tpu.memory_space<vmem>>, vector<8x128xf32>
      tpu.vector_store %arg9[%c0_26, %c0_27], %31 {strides = array<i32>} : memref<8x128xf32, #tpu.memory_space<vmem>>, vector<8x128xf32>,
    } else {
    }
    return
  }
  func.func @transform_0(%arg0: i32, %arg1: i32) -> (i32, i32, i32) {
    %c0_i32 = arith.constant 0 : i32
    %c0_i32_0 = arith.constant 0 : i32
    return %arg0, %arg1, %c0_i32 : i32, i32, i32
  }
  func.func @transform_1(%arg0: i32, %arg1: i32) -> (i32, i32) {
    %c0_i32 = arith.constant 0 : i32
    %c0_i32_0 = arith.constant 0 : i32
    return %arg0, %c0_i32 : i32, i32
  }
  func.func @transform_2(%arg0: i32, %arg1: i32) -> (i32, i32) {
    %c0_i32 = arith.constant 0 : i32
    %c0_i32_0 = arith.constant 0 : i32
    %c0_i32_1 = arith.constant 0 : i32
    return %c0_i32, %c0_i32_0 : i32, i32
  }
  func.func @transform_3(%arg0: i32, %arg1: i32) -> (i32, i32) {
    %c0_i32 = arith.constant 0 : i32
    %c0_i32_0 = arith.constant 0 : i32
    %c0_i32_1 = arith.constant 0 : i32
    return %c0_i32, %c0_i32_0 : i32, i32
  }
  func.func @transform_4(%arg0: i32, %arg1: i32) -> (i32, i32) {
    %c0_i32 = arith.constant 0 : i32
    %c0_i32_0 = arith.constant 0 : i32
    %c0_i32_1 = arith.constant 0 : i32
    return %c0_i32, %c0_i32_0 : i32, i32
  }
  func.func @transform_5(%arg0: i32, %arg1: i32) -> (i32, i32) {
    %c0_i32 = arith.constant 0 : i32
    %c0_i32_0 = arith.constant 0 : i32
    %c0_i32_1 = arith.constant 0 : i32
    return %c0_i32, %c0_i32_0 : i32, i32
  }
  func.func @transform_6(%arg0: i32, %arg1: i32) -> (i32, i32) {
    %c0_i32 = arith.constant 0 : i32
    %c0_i32_0 = arith.constant 0 : i32
    %c0_i32_1 = arith.constant 0 : i32
    return %c0_i32, %c0_i32_0 : i32, i32
  }
  func.func @transform_7(%arg0: i32, %arg1: i32) -> (i32, i32) {
    %c0_i32 = arith.constant 0 : i32
    %c0_i32_0 = arith.constant 0 : i32
    return %arg0, %c0_i32 : i32, i32
  }
}

</mosaic_0001>

<bundles_post_ra>
// kernel: tpu_custom_call.1
= control target key start
LH: loop header
LB: loop body
LE: loop exit
PB: predicated region body
PF: predicated region fallthrough
CT: control target
= control target key end

     0   :  { %s5524_s0 = inlined_call_operand.hbm [shape: bf16[8,16,768], index: 0, kind: input, shape index: {}]   ;;  %s5525_s1 = inlined_call_operand.hbm [shape: f32[8,128], index: 1, kind: input, shape index: {}]   ;;  %s5526_s2 = inlined_call_operand.hbm [shape: bf16[768,512], index: 2, kind: input, shape index: {}]   ;;  %s5527_s3 = inlined_call_operand.hbm [shape: bf16[128,512], index: 3, kind: input, shape index: {}]   ;;  %s5528_s4 = inlined_call_operand.hbm [shape: f32[1,512], index: 4, kind: input, shape index: {}]   ;;  %s5529_s5 = inlined_call_operand.hbm [shape: bf16[512,128], index: 5, kind: input, shape index: {}]   ;;  %s5530_s6 = inlined_call_operand.vmem [shape: f32[1,128], index: 6, kind: input, shape index: {}]   ;;  %s5531_s7 = inlined_call_operand.hbm [shape: f32[8,128], index: 7, kind: output, shape index: {}]  }
   0x1   :  { %5533 = sst [smem:[#allocation31_spill]] %s5525_s1 }
   0x2   :  { %5534 = sst [smem:[#allocation32_spill]] %s5526_s2 }
   0x3   :  { %5535 = sst [smem:[#allocation33_spill]] %s5527_s3 }
   0x4   :  { %12 = vsyncpa [#allocation4], 0 }
   0x5   :  { %14 = vsyncpa [#allocation4 + $0x1], 0 }
   0x6   :  { %15 = vsyncpa [#allocation7], 0 }
   0x7   :  { %16 = vsyncpa [#allocation10], 0 }
   0x8   :  { %17 = vsyncpa [#allocation13], 0 }
   0x9   :  { %18 = vsyncpa [#allocation5], 0  ;;  %s4829_s24 = smov 0   ;;  %s4831_s25 = smov 0  }
   0xa   :  { %s4833_s26 = smov 0   ;;  %s4835_s27 = smov 0  }
   0xb   :  { %s4837_s28 = smov 0   ;;  %s4839_s29 = smov 0  }
   0xc LB: > { %s5532_s30 = sadd.s32 4294967295, %s4773_s29   ;;  %p58_p0 = scmp.ne.s32.totalorder %s4757_s25, %s4753_s24  ;;  %s4773_s29 = sphi %s4839_s29, %s24_s29   ;;  %s4769_s28 = sphi %s4837_s28, %s5630_s28   ;;  %s4765_s27 = sphi %s4835_s27, %s5629_s27   ;;  %s4761_s26 = sphi %s4833_s26, %s5628_s26   ;;  %s4757_s25 = sphi %s4831_s25, %s5627_s25   ;;  %s4753_s24 = sphi %s4829_s24, %s5626_s24  }
   0xd   : > { %p4861_p1 = scmp.eq.s32.totalorder %s5532_s30, 0  ;;  %p3074_p2 = scmp.ge.s32.totalorder %s4773_s29, 1 }
   0xe   : > { %p226_p3 = scmp.lt.s32.totalorder %s4773_s29, 3  ;;  %s5538_s1 = sld [smem:[#allocation31_spill]] }
   0xf   : > { %p4869_p4 = por %p4861_p1, %p58_p0  ;;  %s4775_s14 = smov [#allocation6]  }
  0x10   : > { %p4876_p5 = pnand %p3074_p2, %p226_p3  ;;  %s242_s15 = sshll.u32 %s4775_s14, 4  ;;  %s243_s15 = int_to_ptr.vmem [resolvable:$true] %s242_s15 }
  0x11   : > { %s5541_s3 = sld [smem:[#allocation33_spill]]  ;;  %s4776_s20 = smov [#allocation9]  }
  0x12   : > { %p4403_p6 = pneg %p4876_p5  ;;  %s267_s21 = sshll.u32 %s4776_s20, 4  ;;  %s268_s21 = int_to_ptr.vmem [resolvable:$true] %s267_s21 }
  0x13   : > { %s5542_s2 = sld [smem:[#allocation32_spill]]  ;;  %s4777_s10 = smov 256  }
  0x14   : > { %s240_s12 = sshll.u32 %s5538_s1, 4  ;;  %p4884_p7 = pnand %p4403_p6, %p4861_p1  ;;  %s241_s12 = int_to_ptr.hbm [resolvable:$true] %s240_s12 }
  0x15   : > { %s4778_s11 = smov 16   ;;  %s280_s18 = sshll.u32 %s5528_s4, 4  ;;  %s281_s18 = int_to_ptr.hbm [resolvable:$true] %s280_s18 }
  0x16   : > { %4406 = dma.hbm_to_vmem [thread:$0]  (!%p4884_p7), %s241_s12, 128, %s243_s15, [#allocation7]  }
  0x17   : > { %s265_s19 = sshll.u32 %s5541_s3, 4  ;;  %s4779_s30 = smov [#allocation8]   ;;  %s266_s19 = int_to_ptr.hbm [resolvable:$true] %s265_s19 }
  0x18   : > { %4412 = dma.hbm_to_vmem [thread:$0]  (!%p4884_p7), %s266_s19, 4096, %s268_s21, [#allocation10], %s4777_s10, %s4777_s10, %s4778_s11  }
  0x19   : > { %s251_s24 = sshll.u32 %s5542_s2, 4  ;;  %s253_s12 = sshll.u32 %s4779_s30, 4  ;;  %s252_s24 = int_to_ptr.hbm [resolvable:$true] %s251_s24  ;;  %s254_s12 = int_to_ptr.vmem [resolvable:$true] %s253_s12 }
  0x1a   : > { %4409 = dma.hbm_to_vmem [thread:$0]  (!%p4884_p7), %s252_s24, 24576, %s254_s12, [#allocation7], %s4777_s10, %s4777_s10, %s4778_s11  }
  0x1b   : > { %s4780_s15 = smov [#allocation11]   ;;  %s291_s21 = sshll.u32 %s5529_s5, 4  ;;  %s292_s21 = int_to_ptr.hbm [resolvable:$true] %s291_s21 }
  0x1c   : > { %s282_s20 = sshll.u32 %s4780_s15, 4  ;;  %s4781_s30 = smov [#allocation12]   ;;  %s283_s20 = int_to_ptr.vmem [resolvable:$true] %s282_s20 }
  0x1d   : > { %4415 = dma.hbm_to_vmem [thread:$0]  (!%p4884_p7), %s281_s18, 64, %s283_s20, [#allocation10]  }
  0x1e   : > { %s293_s23 = sshll.u32 %s4781_s30, 4  ;;  %s4782_s14 = smov 64   ;;  %s294_s23 = int_to_ptr.vmem [resolvable:$true] %s293_s23 }
  0x1f   : > { %s4783_s24 = smov 4   ;;  %s45_s10 = sadd.s32 1, %s4761_s26 }
  0x20   : > { %4418 = dma.hbm_to_vmem [thread:$0]  (!%p4884_p7), %s292_s21, 4096, %s294_s23, [#allocation13], %s4782_s14, %s4782_s14, %s4783_s24  }
  0x21   : > { %s33_s11 = sadd.s32 1, %s4769_s28  ;;  %p52_p8 = scmp.ne.s32.totalorder %s4761_s26, %s4757_s25 }
  0x22   : > { %p34_p9 = scmp.ge.s32.totalorder %s33_s11, 2  ;;  %p53_p10 = scmp.eq.s32.totalorder %s4773_s29, 0 }
  0x23   : > { %p4428_p11 = scmp.lt.s32.totalorder %s4773_s29, 2  ;;  %s310_s17 = sand.u32 1, %s4761_s26  }
  0x24   : > { %s5632_s11 = smov (%p34_p9, %s33_s11), 0  ;;  %p54_p12 = por %p53_p10, %p52_p8 }
  0x25   : > { %s41_s18 = ssub.s32 %s4769_s28, %s5632_s11  ;;  %s4374_s12 = smul.u32 192, %s310_s17 }
  0x26   : > { %p43_p13 = scmp.eq.s32.totalorder %s41_s18, 0  ;;  %s4375_s15 = smul.u32 24, %s4769_s28 }
  0x27   : > { %p4420_p0 = pnand %p4428_p11, %p54_p12  ;;  %s314_s21 = scalar_lea.vmem [#allocation3], %s4374_s12 }
  0x28   : > { %s4923_s20 = scalar_select %p43_p13, %s4761_s26, %s45_s10  }
  0x29   : > { %s322_s19 = scalar_lea.hbm %s5524_s0, %s4375_s15  ;;  %s325_s30 = sshll.u32 %s314_s21, 4  ;;  %s326_s30 = int_to_ptr.vmem [resolvable:$true] %s325_s30 }
  0x2a   : > { %s323_s23 = sshll.u32 %s322_s19, 4  ;;  %s311_s14 = scalar_lea.sflag [#allocation4], %s310_s17  ;;  %s324_s23 = int_to_ptr.hbm [resolvable:$true] %s323_s23 }
  0x2b   : > { %s4784_s24 = smov 768   ;;  %s4785_s1 = smov 384  }
  0x2c   : > { %s4786_s2 = smov 24   ;;  %337 = sbr.rel (%p4876_p5) target bundleno = 701 (0x2bd), region = 48 }
  0x2d   : > { %4422 = dma.hbm_to_vmem [thread:$0]  (!%p4420_p0), %s324_s23, 3072, %s326_s30, %s311_s14, %s4784_s24, %s4785_s1, %s4786_s2  }
  0x31   : > { %s339_s10 = sand.u32 1, %s4757_s25  }
  0x32   : > { %s4376_s18 = smul.u32 192, %s339_s10  ;;  %s340_s3 = scalar_lea.sflag [#allocation4], %s339_s10 }
  0x34   : > { %s4931_s16 = scalar_lea.vmem [#allocation3], %s4376_s18 }
  0x35   : > { %4732 = dma.done.wait (%p4869_p4), %s340_s3, 3072  }
  0x36   : > { %4734 = vsyncadd (%p4869_p4), %s340_s3, 4294964224 }
  0x37   : > { %4736 = dma.done.wait (%p4861_p1), [#allocation7], 24704  }
  0x38   : > { %4738 = vsyncadd (%p4861_p1), [#allocation7], 4294942592 }
  0x39   : > { %4740 = dma.done.wait (%p4861_p1), [#allocation10], 4160  }
  0x3a   : > { %4742 = vsyncadd (%p4861_p1), [#allocation10], 4294963136 }
  0x3b   : > { %4744 = dma.done.wait (%p4861_p1), [#allocation13], 4096  }
  0x3c   : > { %4746 = vsyncadd (%p4861_p1), [#allocation13], 4294963200  ;;  %p3088_p2 = scmp.ne.s32.totalorder %s4765_s27, 0 }
  0x3e   : > { %399 = sbr.rel (%p3088_p2) target bundleno = 74 (0x4a), region = 76 }
  0x43   : > { %v4787_v0 = vmov 0.0  }
  0x44   : > { %400 = vst [vmem:[#allocation2 + $0x28] sm:$0xff] %v4787_v0 }
  0x45   : > { %401 = vst [vmem:[#allocation2 + $0x10] sm:$0xff] %v4787_v0 }
  0x46   : > { %402 = vst [vmem:[#allocation2 + $0x8] sm:$0xff] %v4787_v0 }
  0x47   : > { %403 = vst [vmem:[#allocation2] sm:$0xff] %v4787_v0 }
  0x48   : > { %404 = vst [vmem:[#allocation2 + $0x18] sm:$0xff] %v4787_v0 }
  0x49   : > { %405 = vst [vmem:[#allocation2 + $0x20] sm:$0xff] %v4787_v0 }
  0x4a PF: > { %v4951_v1 = vld [vmem:[%s4931_s16] sm:$0xff]  ;;  %v4954_v2 = vld [vmem:[%s4931_s16 + $0x8] sm:$0xff]  ;;  %v4957_v3 = vld [vmem:[%s4931_s16 + $0x10] sm:$0xff]  ;;  %vm820_vm0 = vcmask 1041409   ;;  %vm822_vm1 = vcmask 1042434   ;;  %vm824_vm2 = vcmask 1043459  }
  0x4b   : > { %v4960_v4 = vld [vmem:[%s4931_s16 + $0x18] sm:$0xff]  ;;  %v4963_v5 = vld [vmem:[%s4931_s16 + $0x20] sm:$0xff]  ;;  %v4966_v6 = vld [vmem:[%s4931_s16 + $0x28] sm:$0xff]  ;;  %v436_v7 = vunpack.c.l.bf16 %v4951_v1  ;;  %v437_v8 = vunpack.c.h.bf16 %v4951_v1  ;;  %v438_v9 = vunpack.c.l.bf16 %v4954_v2  ;;  %v439_v13 = vunpack.c.h.bf16 %v4954_v2  ;;  %p3089_p1 = scmp.ne.s32.totalorder %s4765_s27, 1 }
  0x4c   : > { %v4972_v10 = vld [vmem:[%s4931_s16 + $0x30] sm:$0xff]  ;;  %v4975_v11 = vld [vmem:[%s4931_s16 + $0x38] sm:$0xff]  ;;  %v4978_v12 = vld [vmem:[%s4931_s16 + $0x40] sm:$0xff]  ;;  %v440_v14 = vunpack.c.l.bf16 %v4957_v3  ;;  %v441_v15 = vunpack.c.h.bf16 %v4957_v3  ;;  %v442_v16 = vunpack.c.l.bf16 %v4960_v4  ;;  %v443_v20 = vunpack.c.h.bf16 %v4960_v4 }
  0x4d   : > { %v4985_v17 = vld [vmem:[%s4931_s16 + $0x48] sm:$0xff]  ;;  %v4988_v18 = vld [vmem:[%s4931_s16 + $0x50] sm:$0xff]  ;;  %v4991_v19 = vld [vmem:[%s4931_s16 + $0x58] sm:$0xff]  ;;  %v444_v21 = vunpack.c.l.bf16 %v4963_v5  ;;  %v445_v22 = vunpack.c.h.bf16 %v4963_v5  ;;  %v446_v23 = vunpack.c.l.bf16 %v4966_v6  ;;  %v447_v26 = vunpack.c.h.bf16 %v4966_v6 }
  0x4e   : > { %v4998_v24 = vld [vmem:[%s4931_s16 + $0x60] sm:$0xff]  ;;  %v5001_v25 = vld [vmem:[%s4931_s16 + $0x68] sm:$0xff]  ;;  %v448_v27 = vunpack.c.l.bf16 %v4972_v10  ;;  %v449_v28 = vunpack.c.h.bf16 %v4972_v10  ;;  %v450_v29 = vunpack.c.l.bf16 %v4975_v11  ;;  %v5008_v30 = vld [vmem:[%s4931_s16 + $0x70] sm:$0xff]  ;;  %v451_v32 = vunpack.c.h.bf16 %v4975_v11 }
  0x4f   : > { %v5011_v31 = vld [vmem:[%s4931_s16 + $0x78] sm:$0xff]  ;;  %v452_v33 = vunpack.c.l.bf16 %v4978_v12  ;;  %v453_v34 = vunpack.c.h.bf16 %v4978_v12  ;;  %v5018_v36 = vld [vmem:[%s4931_s16 + $0x80] sm:$0xff]  ;;  %v5021_v37 = vld [vmem:[%s4931_s16 + $0x88] sm:$0xff]  ;;  %v484_v62 = vrot.slane %v436_v7, 4  ;;  %v490_v0 = vrot.slane %v437_v8, 4 }
  0x50   : > { %v5028_v42 = vld [vmem:[%s4931_s16 + $0x90] sm:$0xff]  ;;  %v5031_v43 = vld [vmem:[%s4931_s16 + $0x98] sm:$0xff]  ;;  %v5038_v48 = vld [vmem:[%s4931_s16 + $0xa0] sm:$0xff]  ;;  %v496_v53 = vrot.slane %v438_v9, 4  ;;  %v502_v57 = vrot.slane %v439_v13, 4  ;;  %v508_v58 = vrot.slane %v440_v14, 4 }
  0x51   : > { %v5041_v49 = vld [vmem:[%s4931_s16 + $0xa8] sm:$0xff]  ;;  %v5048_v54 = vld [vmem:[%s4931_s16 + $0xb0] sm:$0xff]  ;;  %v5051_v55 = vld [vmem:[%s4931_s16 + $0xb8] sm:$0xff]  ;;  %v514_v60 = vrot.slane %v441_v15, 4  ;;  %v520_v61 = vrot.slane %v442_v16, 4  ;;  %v526_v59 = vrot.slane %v443_v20, 4  ;;  %v485_v56 = vadd.f32 %v484_v62, %v436_v7 }
  0x52   : > { %v491_v63 = vadd.f32 %v490_v0, %v437_v8  ;;  %v497_v52 = vadd.f32 %v496_v53, %v438_v9  ;;  %v503_v51 = vadd.f32 %v502_v57, %v439_v13  ;;  %v509_v50 = vadd.f32 %v508_v58, %v440_v14 }
  0x53   : > { %v515_v47 = vadd.f32 %v514_v60, %v441_v15  ;;  %v521_v46 = vadd.f32 %v520_v61, %v442_v16  ;;  %v527_v7 = vadd.f32 %v526_v59, %v443_v20  ;;  %v486_v1 = vrot.slane %v485_v56, 2 }
  0x54   : > { %v492_v8 = vrot.slane %v491_v63, 2  ;;  %v498_v62 = vrot.slane %v497_v52, 2  ;;  %v504_v0 = vrot.slane %v503_v51, 2  ;;  %v510_v9 = vrot.slane %v509_v50, 2 }
  0x55   : > { %v516_v53 = vrot.slane %v515_v47, 2  ;;  %v522_v2 = vrot.slane %v521_v46, 2  ;;  %v528_v13 = vrot.slane %v527_v7, 2  ;;  %v487_v57 = vadd.f32 %v486_v1, %v485_v56 }
  0x56   : > { %v493_v45 = vadd.f32 %v492_v8, %v491_v63  ;;  %v499_v14 = vadd.f32 %v498_v62, %v497_v52  ;;  %v505_v58 = vadd.f32 %v504_v0, %v503_v51  ;;  %v511_v3 = vadd.f32 %v510_v9, %v509_v50 }
  0x57   : > { %v517_v15 = vadd.f32 %v516_v53, %v515_v47  ;;  %v523_v60 = vadd.f32 %v522_v2, %v521_v46  ;;  %v529_v44 = vadd.f32 %v528_v13, %v527_v7  ;;  %v488_v16 = vrot.slane %v487_v57, 1 }
  0x58   : > { %v494_v61 = vrot.slane %v493_v45, 1  ;;  %v500_v4 = vrot.slane %v499_v14, 1  ;;  %v506_v20 = vrot.slane %v505_v58, 1  ;;  %v512_v41 = vrot.slane %v511_v3, 1 }
  0x59   : > { %v518_v40 = vrot.slane %v517_v15, 1  ;;  %v524_v39 = vrot.slane %v523_v60, 1  ;;  %v5102_v38 = vadd.f32 %v488_v16, %v487_v57  ;;  %v530_v51 = vrot.slane %v529_v44, 1 }
  0x5a   : > { %v5104_v35 = vadd.f32 %v494_v61, %v493_v45  ;;  %v5106_v56 = vadd.f32 %v500_v4, %v499_v14  ;;  %v5108_v50 = vadd.f32 %v506_v20, %v505_v58  ;;  %v5110_v46 = vadd.f32 %v512_v41, %v511_v3 }
  0x5b   : > { %v5112_v47 = vadd.f32 %v518_v40, %v517_v15  ;;  %v5114_v52 = vadd.f32 %v524_v39, %v523_v60  ;;  %v532_v63 = vrot.slane %v444_v21, 4  ;;  %v538_v7 = vrot.slane %v445_v22, 4 }
  0x5c   : > { %v544_v45 = vrot.slane %v446_v23, 4  ;;  %v550_v1 = vrot.slane %v447_v26, 4  ;;  %v556_v41 = vrot.slane %v448_v27, 4  ;;  %v562_v40 = vrot.slane %v449_v28, 4 }
  0x5d   : > { %5543 = vst [vmem:[#allocation20_spill] sm:$0xff] %v5112_v47  ;;  %v568_v39 = vrot.slane %v450_v29, 4  ;;  %v574_v8 = vrot.slane %v451_v32, 4  ;;  %v533_v62 = vadd.f32 %v532_v63, %v444_v21  ;;  %v539_v0 = vadd.f32 %v538_v7, %v445_v22 }
  0x5e   : > { %v545_v9 = vadd.f32 %v544_v45, %v446_v23  ;;  %v551_v53 = vadd.f32 %v550_v1, %v447_v26  ;;  %v557_v2 = vadd.f32 %v556_v41, %v448_v27  ;;  %v563_v13 = vadd.f32 %v562_v40, %v449_v28 }
  0x5f   : > { %v569_v57 = vadd.f32 %v568_v39, %v450_v29  ;;  %v575_v21 = vadd.f32 %v574_v8, %v451_v32  ;;  %v534_v5 = vrot.slane %v533_v62, 2  ;;  %v540_v22 = vrot.slane %v539_v0, 2 }
  0x60   : > { %v546_v14 = vrot.slane %v545_v9, 2  ;;  %v552_v58 = vrot.slane %v551_v53, 2  ;;  %v558_v23 = vrot.slane %v557_v2, 2  ;;  %v564_v3 = vrot.slane %v563_v13, 2 }
  0x61   : > { %v570_v6 = vrot.slane %v569_v57, 2  ;;  %v576_v26 = vrot.slane %v575_v21, 2  ;;  %v535_v15 = vadd.f32 %v534_v5, %v533_v62  ;;  %v541_v60 = vadd.f32 %v540_v22, %v539_v0 }
  0x62   : > { %v547_v27 = vadd.f32 %v546_v14, %v545_v9  ;;  %v553_v16 = vadd.f32 %v552_v58, %v551_v53  ;;  %v559_v10 = vadd.f32 %v558_v23, %v557_v2  ;;  %v565_v28 = vadd.f32 %v564_v3, %v563_v13 }
  0x63   : > { %v571_v61 = vadd.f32 %v570_v6, %v569_v57  ;;  %v577_v4 = vadd.f32 %v576_v26, %v575_v21  ;;  %v536_v29 = vrot.slane %v535_v15, 1  ;;  %v542_v20 = vrot.slane %v541_v60, 1 }
  0x64   : > { %v548_v11 = vrot.slane %v547_v27, 1  ;;  %v554_v32 = vrot.slane %v553_v16, 1  ;;  %v5148_v63 = vadd.f32 %v530_v51, %v529_v44  ;;  %v560_v7 = vrot.slane %v559_v10, 1 }
  0x65   : > { %v566_v45 = vrot.slane %v565_v28, 1  ;;  %v572_v1 = vrot.slane %v571_v61, 1  ;;  %v5150_v41 = vadd.f32 %v536_v29, %v535_v15  ;;  %v5152_v40 = vadd.f32 %v542_v20, %v541_v60 }
  0x66   : > { %v5154_v39 = vadd.f32 %v548_v11, %v547_v27  ;;  %v578_v8 = vrot.slane %v577_v4, 1  ;;  %v5156_v62 = vadd.f32 %v554_v32, %v553_v16  ;;  %v5158_v0 = vadd.f32 %v560_v7, %v559_v10 }
  0x67   : > { %v5160_v9 = vadd.f32 %v566_v45, %v565_v28  ;;  %v5162_v53 = vadd.f32 %v572_v1, %v571_v61  ;;  %v580_v44 = vrot.slane %v452_v33, 4  ;;  %v586_v51 = vrot.slane %v453_v34, 4 }
  0x68   : > { %5544 = vst [vmem:[#allocation21_spill] sm:$0xff] %v5154_v39  ;;  %v5546_v2 = vunpack.c.l.bf16 %v4985_v17  ;;  %v5547_v57 = vunpack.c.h.bf16 %v4985_v17  ;;  %v5548_v5 = vunpack.c.l.bf16 %v4988_v18  ;;  %v5549_v14 = vunpack.c.h.bf16 %v4988_v18 }
  0x69   : > { %5545 = vst [vmem:[#allocation22_spill] sm:$0xff] %v5156_v62  ;;  %v5550_v23 = vunpack.c.l.bf16 %v4991_v19  ;;  %v5551_v6 = vunpack.c.h.bf16 %v4991_v19  ;;  %v581_v15 = vadd.f32 %v580_v44, %v452_v33  ;;  %v587_v60 = vadd.f32 %v586_v51, %v453_v34 }
  0x6a   : > { %v592_v13 = vrot.slane %v5546_v2, 4  ;;  %v598_v21 = vrot.slane %v5547_v57, 4  ;;  %v604_v22 = vrot.slane %v5548_v5, 4  ;;  %v610_v58 = vrot.slane %v5549_v14, 4 }
  0x6b   : > { %v616_v3 = vrot.slane %v5550_v23, 4  ;;  %v622_v26 = vrot.slane %v5551_v6, 4  ;;  %v5552_v27 = vmov %v5546_v2  ;;  %v5553_v10 = vmov %v5547_v57 }
  0x6c   : > { %v593_v16 = vadd.f32 %v592_v13, %v5552_v27  ;;  %v599_v28 = vadd.f32 %v598_v21, %v5553_v10  ;;  %v5554_v61 = vmov %v5548_v5  ;;  %v5555_v20 = vmov %v5549_v14 }
  0x6d   : > { %v605_v29 = vadd.f32 %v604_v22, %v5554_v61  ;;  %v611_v11 = vadd.f32 %v610_v58, %v5555_v20  ;;  %v5556_v32 = vmov %v5550_v23  ;;  %v5557_v33 = vmov %v5551_v6 }
  0x6e   : > { %v617_v7 = vadd.f32 %v616_v3, %v5556_v32  ;;  %v623_v45 = vadd.f32 %v622_v26, %v5557_v33  ;;  %v582_v12 = vrot.slane %v581_v15, 2  ;;  %v588_v34 = vrot.slane %v587_v60, 2 }
  0x6f   : > { %v594_v1 = vrot.slane %v593_v16, 2  ;;  %v600_v44 = vrot.slane %v599_v28, 2  ;;  %v606_v51 = vrot.slane %v605_v29, 2  ;;  %v612_v2 = vrot.slane %v611_v11, 2 }
  0x70   : > { %v618_v17 = vrot.slane %v617_v7, 2  ;;  %v624_v13 = vrot.slane %v623_v45, 2  ;;  %v583_v57 = vadd.f32 %v582_v12, %v581_v15  ;;  %v589_v21 = vadd.f32 %v588_v34, %v587_v60 }
  0x71   : > { %v595_v5 = vadd.f32 %v594_v1, %v593_v16  ;;  %v601_v22 = vadd.f32 %v600_v44, %v599_v28  ;;  %v607_v18 = vadd.f32 %v606_v51, %v605_v29  ;;  %v613_v14 = vadd.f32 %v612_v2, %v611_v11 }
  0x72   : > { %v619_v58 = vadd.f32 %v618_v17, %v617_v7  ;;  %v625_v23 = vadd.f32 %v624_v13, %v623_v45  ;;  %v584_v3 = vrot.slane %v583_v57, 1  ;;  %v590_v6 = vrot.slane %v589_v21, 1 }
  0x73   : > { %v596_v19 = vrot.slane %v595_v5, 1  ;;  %v602_v26 = vrot.slane %v601_v22, 1  ;;  %v5196_v27 = vadd.f32 %v578_v8, %v577_v4  ;;  %v608_v10 = vrot.slane %v607_v18, 1 }
  0x74   : > { %v614_v61 = vrot.slane %v613_v14, 1  ;;  %v620_v20 = vrot.slane %v619_v58, 1  ;;  %v5198_v32 = vadd.f32 %v584_v3, %v583_v57  ;;  %v5200_v33 = vadd.f32 %v590_v6, %v589_v21 }
  0x75   : > { %v5202_v15 = vadd.f32 %v596_v19, %v595_v5  ;;  %v626_v60 = vrot.slane %v625_v23, 1  ;;  %v5204_v16 = vadd.f32 %v602_v26, %v601_v22  ;;  %v5206_v28 = vadd.f32 %v608_v10, %v607_v18 }
  0x76   : > { %5558 = vst [vmem:[#allocation23_spill] sm:$0xff] %v5198_v32  ;;  %v5208_v29 = vadd.f32 %v614_v61, %v613_v14  ;;  %v5210_v11 = vadd.f32 %v620_v20, %v619_v58  ;;  %v5561_v4 = vunpack.c.l.bf16 %v4998_v24  ;;  %v5562_v7 = vunpack.c.h.bf16 %v4998_v24 }
  0x77   : > { %5559 = vst [vmem:[#allocation24_spill] sm:$0xff] %v5200_v33  ;;  %v5563_v12 = vunpack.c.l.bf16 %v5001_v25  ;;  %v5564_v1 = vunpack.c.h.bf16 %v5001_v25  ;;  %v5565_v51 = vunpack.c.l.bf16 %v5008_v30  ;;  %v5566_v17 = vunpack.c.h.bf16 %v5008_v30 }
  0x78   : > { %5560 = vst [vmem:[#allocation25_spill] sm:$0xff] %v5210_v11  ;;  %v628_v8 = vrot.slane %v5561_v4, 4  ;;  %v634_v45 = vrot.slane %v5562_v7, 4  ;;  %v5567_v57 = vunpack.c.l.bf16 %v5011_v31  ;;  %v5568_v5 = vunpack.c.h.bf16 %v5011_v31 }
  0x79   : > { %v640_v34 = vrot.slane %v5563_v12, 4  ;;  %v646_v44 = vrot.slane %v5564_v1, 4  ;;  %v652_v2 = vrot.slane %v5565_v51, 4  ;;  %v658_v13 = vrot.slane %v5566_v17, 4 }
  0x7a   : > { %v664_v21 = vrot.slane %v5567_v57, 4  ;;  %v670_v22 = vrot.slane %v5568_v5, 4  ;;  %v5569_v18 = vmov %v5561_v4  ;;  %v5570_v58 = vmov %v5562_v7 }
  0x7b   : > { %v629_v14 = vadd.f32 %v628_v8, %v5569_v18  ;;  %v635_v3 = vadd.f32 %v634_v45, %v5570_v58  ;;  %v5571_v6 = vmov %v5563_v12  ;;  %v5572_v26 = vmov %v5564_v1 }
  0x7c   : > { %v641_v19 = vadd.f32 %v640_v34, %v5571_v6  ;;  %v647_v10 = vadd.f32 %v646_v44, %v5572_v26  ;;  %v5573_v61 = vmov %v5565_v51  ;;  %v5574_v4 = vmov %v5566_v17 }
  0x7d   : > { %v653_v20 = vadd.f32 %v652_v2, %v5573_v61  ;;  %v659_v7 = vadd.f32 %v658_v13, %v5574_v4  ;;  %v5575_v12 = vmov %v5567_v57  ;;  %v5576_v8 = vmov %v5568_v5 }
  0x7e   : > { %v665_v1 = vadd.f32 %v664_v21, %v5575_v12  ;;  %v671_v51 = vadd.f32 %v670_v22, %v5576_v8  ;;  %v630_v24 = vrot.slane %v629_v14, 2  ;;  %v636_v45 = vrot.slane %v635_v3, 2 }
  0x7f   : > { %v642_v17 = vrot.slane %v641_v19, 2  ;;  %v648_v57 = vrot.slane %v647_v10, 2  ;;  %v654_v34 = vrot.slane %v653_v20, 2  ;;  %v660_v5 = vrot.slane %v659_v7, 2 }
  0x80   : > { %v666_v25 = vrot.slane %v665_v1, 2  ;;  %v672_v44 = vrot.slane %v671_v51, 2  ;;  %v631_v18 = vadd.f32 %v630_v24, %v629_v14  ;;  %v637_v58 = vadd.f32 %v636_v45, %v635_v3 }
  0x81   : > { %v643_v2 = vadd.f32 %v642_v17, %v641_v19  ;;  %v649_v6 = vadd.f32 %v648_v57, %v647_v10  ;;  %v655_v30 = vadd.f32 %v654_v34, %v653_v20  ;;  %v661_v13 = vadd.f32 %v660_v5, %v659_v7 }
  0x82   : > { %v667_v26 = vadd.f32 %v666_v25, %v665_v1  ;;  %v673_v61 = vadd.f32 %v672_v44, %v671_v51  ;;  %v632_v21 = vrot.slane %v631_v18, 1  ;;  %v638_v4 = vrot.slane %v637_v58, 1 }
  0x83   : > { %v644_v31 = vrot.slane %v643_v2, 1  ;;  %v650_v22 = vrot.slane %v649_v6, 1  ;;  %v5244_v12 = vadd.f32 %v626_v60, %v625_v23  ;;  %v656_v8 = vrot.slane %v655_v30, 1 }
  0x84   : > { %v662_v59 = vrot.slane %v661_v13, 1  ;;  %v668_v33 = vrot.slane %v667_v26, 1  ;;  %v5246_v11 = vadd.f32 %v632_v21, %v631_v18  ;;  %v5248_v62 = vadd.f32 %v638_v4, %v637_v58 }
  0x85   : > { %5577 = vst [vmem:[#allocation26_spill] sm:$0xff] %v5244_v12  ;;  %v5250_v14 = vadd.f32 %v644_v31, %v643_v2  ;;  %v674_v3 = vrot.slane %v673_v61, 1  ;;  %v5252_v19 = vadd.f32 %v650_v22, %v649_v6  ;;  %v5254_v10 = vadd.f32 %v656_v8, %v655_v30 }
  0x86   : > { %v5256_v20 = vadd.f32 %v662_v59, %v661_v13  ;;  %v5258_v7 = vadd.f32 %v668_v33, %v667_v26  ;;  %v5580_v23 = vunpack.c.l.bf16 %v5018_v36  ;;  %v5581_v1 = vunpack.c.h.bf16 %v5018_v36 }
  0x87   : > { %5578 = vst [vmem:[#allocation27_spill] sm:$0xff] %v5254_v10  ;;  %v5582_v24 = vunpack.c.l.bf16 %v5021_v37  ;;  %v5583_v17 = vunpack.c.h.bf16 %v5021_v37  ;;  %v5584_v34 = vunpack.c.l.bf16 %v5028_v42  ;;  %v5585_v59 = vunpack.c.h.bf16 %v5028_v42 }
  0x88   : > { %5579 = vst [vmem:[#allocation28_spill] sm:$0xff] %v5256_v20  ;;  %v676_v60 = vrot.slane %v5580_v23, 4  ;;  %v682_v51 = vrot.slane %v5581_v1, 4  ;;  %v5586_v33 = vunpack.c.l.bf16 %v5031_v43  ;;  %v5587_v18 = vunpack.c.h.bf16 %v5031_v43 }
  0x89   : > { %v688_v45 = vrot.slane %v5582_v24, 4  ;;  %v694_v57 = vrot.slane %v5583_v17, 4  ;;  %v700_v5 = vrot.slane %v5584_v34, 4  ;;  %v706_v25 = vrot.slane %v5585_v59, 4 }
  0x8a   : > { %v712_v44 = vrot.slane %v5586_v33, 4  ;;  %v718_v58 = vrot.slane %v5587_v18, 4  ;;  %v5588_v2 = vmov %v5580_v23  ;;  %v5589_v30 = vmov %v5581_v1 }
  0x8b   : > { %v677_v6 = vadd.f32 %v676_v60, %v5588_v2  ;;  %v683_v13 = vadd.f32 %v682_v51, %v5589_v30  ;;  %v5590_v26 = vmov %v5582_v24  ;;  %v5591_v4 = vmov %v5583_v17 }
  0x8c   : > { %v689_v21 = vadd.f32 %v688_v45, %v5590_v26  ;;  %v695_v31 = vadd.f32 %v694_v57, %v5591_v4  ;;  %v5592_v22 = vmov %v5584_v34  ;;  %v5593_v23 = vmov %v5585_v59 }
  0x8d   : > { %v701_v8 = vadd.f32 %v700_v5, %v5592_v22  ;;  %v707_v1 = vadd.f32 %v706_v25, %v5593_v23  ;;  %v5594_v24 = vmov %v5586_v33  ;;  %v5595_v60 = vmov %v5587_v18 }
  0x8e   : > { %v713_v17 = vadd.f32 %v712_v44, %v5594_v24  ;;  %v719_v34 = vadd.f32 %v718_v58, %v5595_v60  ;;  %v678_v36 = vrot.slane %v677_v6, 2  ;;  %v684_v51 = vrot.slane %v683_v13, 2 }
  0x8f   : > { %v690_v59 = vrot.slane %v689_v21, 2  ;;  %v696_v33 = vrot.slane %v695_v31, 2  ;;  %v702_v45 = vrot.slane %v701_v8, 2  ;;  %v708_v18 = vrot.slane %v707_v1, 2 }
  0x90   : > { %v714_v37 = vrot.slane %v713_v17, 2  ;;  %v720_v57 = vrot.slane %v719_v34, 2  ;;  %v679_v2 = vadd.f32 %v678_v36, %v677_v6  ;;  %v685_v30 = vadd.f32 %v684_v51, %v683_v13 }
  0x91   : > { %v691_v5 = vadd.f32 %v690_v59, %v689_v21  ;;  %v697_v26 = vadd.f32 %v696_v33, %v695_v31  ;;  %v703_v42 = vadd.f32 %v702_v45, %v701_v8  ;;  %v709_v25 = vadd.f32 %v708_v18, %v707_v1 }
  0x92   : > { %v715_v4 = vadd.f32 %v714_v37, %v713_v17  ;;  %v721_v22 = vadd.f32 %v720_v57, %v719_v34  ;;  %v680_v44 = vrot.slane %v679_v2, 1  ;;  %v686_v23 = vrot.slane %v685_v30, 1 }
  0x93   : > { %v692_v43 = vrot.slane %v691_v5, 1  ;;  %v698_v58 = vrot.slane %v697_v26, 1  ;;  %v5292_v24 = vadd.f32 %v674_v3, %v673_v61  ;;  %v704_v60 = vrot.slane %v703_v42, 1 }
  0x94   : > { %v710_v20 = vrot.slane %v709_v25, 1  ;;  %v716_v12 = vrot.slane %v715_v4, 1  ;;  %v5294_v10 = vadd.f32 %v680_v44, %v679_v2  ;;  %v5296_v47 = vadd.f32 %v686_v23, %v685_v30 }
  0x95   : > { %v5298_v6 = vadd.f32 %v692_v43, %v691_v5  ;;  %v722_v13 = vrot.slane %v721_v22, 1  ;;  %v5300_v21 = vadd.f32 %v698_v58, %v697_v26  ;;  %v5302_v31 = vadd.f32 %v704_v60, %v703_v42 }
  0x96   : > { %v5304_v8 = vadd.f32 %v710_v20, %v709_v25  ;;  %v5306_v1 = vadd.f32 %v716_v12, %v715_v4  ;;  %v5598_v61 = vunpack.c.l.bf16 %v5038_v48  ;;  %v5599_v17 = vunpack.c.h.bf16 %v5038_v48 }
  0x97   : > { %5596 = vst [vmem:[#allocation29_spill] sm:$0xff] %v5298_v6  ;;  %v5600_v36 = vunpack.c.l.bf16 %v5041_v49  ;;  %v5601_v59 = vunpack.c.h.bf16 %v5041_v49  ;;  %v5602_v45 = vunpack.c.l.bf16 %v5048_v54  ;;  %v5603_v20 = vunpack.c.h.bf16 %v5048_v54 }
  0x98   : > { %5597 = vst [vmem:[#allocation30_spill] sm:$0xff] %v5300_v21  ;;  %v724_v3 = vrot.slane %v5598_v61, 4  ;;  %v730_v34 = vrot.slane %v5599_v17, 4  ;;  %v5604_v12 = vunpack.c.l.bf16 %v5051_v55  ;;  %v5605_v2 = vunpack.c.h.bf16 %v5051_v55 }
  0x99   : > { %v736_v51 = vrot.slane %v5600_v36, 4  ;;  %v742_v33 = vrot.slane %v5601_v59, 4  ;;  %v748_v18 = vrot.slane %v5602_v45, 4  ;;  %v754_v37 = vrot.slane %v5603_v20, 4 }
  0x9a   : > { %v760_v57 = vrot.slane %v5604_v12, 4  ;;  %v766_v30 = vrot.slane %v5605_v2, 4  ;;  %v5606_v5 = vmov %v5598_v61  ;;  %v5607_v42 = vmov %v5599_v17 }
  0x9b   : > { %v725_v26 = vadd.f32 %v724_v3, %v5606_v5  ;;  %v731_v25 = vadd.f32 %v730_v34, %v5607_v42  ;;  %v5608_v4 = vmov %v5600_v36  ;;  %v5609_v23 = vmov %v5601_v59 }
  0x9c   : > { %v737_v44 = vadd.f32 %v736_v51, %v5608_v4  ;;  %v743_v43 = vadd.f32 %v742_v33, %v5609_v23  ;;  %v5610_v58 = vmov %v5602_v45  ;;  %v5611_v61 = vmov %v5603_v20 }
  0x9d   : > { %v749_v60 = vadd.f32 %v748_v18, %v5610_v58  ;;  %v755_v17 = vadd.f32 %v754_v37, %v5611_v61  ;;  %v5612_v36 = vmov %v5604_v12  ;;  %v5613_v3 = vmov %v5605_v2 }
  0x9e   : > { %v761_v59 = vadd.f32 %v760_v57, %v5612_v36  ;;  %v767_v45 = vadd.f32 %v766_v30, %v5613_v3  ;;  %v726_v48 = vrot.slane %v725_v26, 2  ;;  %v732_v34 = vrot.slane %v731_v25, 2 }
  0x9f   : > { %v738_v20 = vrot.slane %v737_v44, 2  ;;  %v744_v12 = vrot.slane %v743_v43, 2  ;;  %v750_v51 = vrot.slane %v749_v60, 2  ;;  %v756_v2 = vrot.slane %v755_v17, 2 }
  0xa0   : > { %v762_v49 = vrot.slane %v761_v59, 2  ;;  %v768_v33 = vrot.slane %v767_v45, 2  ;;  %v727_v5 = vadd.f32 %v726_v48, %v725_v26  ;;  %v733_v42 = vadd.f32 %v732_v34, %v731_v25 }
  0xa1   : > { %v739_v18 = vadd.f32 %v738_v20, %v737_v44  ;;  %v745_v4 = vadd.f32 %v744_v12, %v743_v43  ;;  %v751_v54 = vadd.f32 %v750_v51, %v749_v60  ;;  %v757_v37 = vadd.f32 %v756_v2, %v755_v17  ;;  %v5615_v12 = vld [vmem:[#allocation23_spill] sm:$0xff]  ;;  %v5616_v2 = vld [vmem:[#allocation20_spill] sm:$0xff] }
  0xa2   : > { %v763_v23 = vadd.f32 %v762_v49, %v761_v59  ;;  %v5340_v58 = vadd.f32 %v768_v33, %v767_v45  ;;  %v728_v57 = vrot.slane %v727_v5, 1  ;;  %v734_v55 = vrot.slane %v733_v42, 1  ;;  %v409_v45 = vld [vmem:[#allocation2] sm:$0xff] }
  0xa3   : > { %v740_v30 = vrot.slane %v739_v18, 1  ;;  %v746_v61 = vrot.slane %v745_v4, 1  ;;  %v723_v36 = vadd.f32 %v722_v13, %v721_v22  ;;  %v752_v3 = vrot.slane %v751_v54, 1 }
  0xa4   : > { %v758_v21 = vrot.slane %v757_v37, 1  ;;  %v764_v6 = vrot.slane %v763_v23, 1  ;;  %v5342_v32 = vadd.f32 %v728_v57, %v727_v5  ;;  %v5344_v39 = vadd.f32 %v734_v55, %v733_v42  ;;  %v5618_v5 = vld [vmem:[#allocation25_spill] sm:$0xff]  ;;  %v5621_v55 = vld [vmem:[#allocation26_spill] sm:$0xff] }
  0xa5   : > { %v741_v26 = vadd.f32 %v740_v30, %v739_v18  ;;  %v770_v25 = vrot.slane %v5340_v58, 1  ;;  %v747_v44 = vadd.f32 %v746_v61, %v745_v4  ;;  %v753_v43 = vadd.f32 %v752_v3, %v751_v54  ;;  %v5619_v18 = vld [vmem:[#allocation24_spill] sm:$0xff]  ;;  %v410_v61 = vld [vmem:[#allocation2 + $0x18] sm:$0xff] }
  0xa6   : > { %v759_v60 = vadd.f32 %v758_v21, %v757_v37  ;;  %v765_v17 = vadd.f32 %v764_v6, %v763_v23  ;;  %vm826_vm3 = vcmask 1044484   ;;  %v821_v22 = vsel %vm820_vm0, %v5114_v52, %v5102_v38 }
  0xa7   : > { %vm828_vm4 = vcmask 1045509   ;;  %vm830_vm5 = vcmask 1046534   ;;  %vm832_vm6 = vcmask 1047559   ;;  %v823_v13 = vsel %vm822_vm1, %v5158_v0, %v821_v22 }
  0xa8   : > { %v834_v59 = vsel %vm820_vm0, %v5148_v63, %v5104_v35  ;;  %v841_v6 = vsel %vm820_vm0, %v5150_v41, %v5106_v56  ;;  %v848_v21 = vsel %vm820_vm0, %v5152_v40, %v5108_v50  ;;  %v825_v38 = vsel %vm824_vm2, %v5202_v15, %v823_v13  ;;  %v406_v15 = vld [vmem:[#allocation2 + $0x28] sm:$0xff] }
  0xa9   : > { %v835_v52 = vsel %vm822_vm1, %v5160_v9, %v834_v59  ;;  %v842_v0 = vsel %vm822_vm1, %v5162_v53, %v841_v6  ;;  %v849_v35 = vsel %vm822_vm1, %v5196_v27, %v848_v21  ;;  %v827_v63 = vsel %vm826_vm3, %v5246_v11, %v825_v38 }
  0xaa   : > { %v836_v56 = vsel %vm824_vm2, %v5204_v16, %v835_v52  ;;  %v843_v50 = vsel %vm824_vm2, %v5206_v28, %v842_v0  ;;  %v850_v41 = vsel %vm824_vm2, %v5208_v29, %v849_v35  ;;  %v829_v40 = vsel %vm828_vm4, %v5258_v7, %v827_v63  ;;  %v407_v16 = vld [vmem:[#allocation2 + $0x10] sm:$0xff]  ;;  %v408_v7 = vld [vmem:[#allocation2 + $0x8] sm:$0xff] }
  0xab   : > { %v837_v9 = vsel %vm826_vm3, %v5248_v62, %v836_v56  ;;  %v844_v53 = vsel %vm826_vm3, %v5250_v14, %v843_v50  ;;  %v851_v27 = vsel %vm826_vm3, %v5252_v19, %v850_v41  ;;  %v831_v28 = vsel %vm830_vm5, %v5302_v31, %v829_v40 }
  0xac   : > { %v838_v29 = vsel %vm828_vm4, %v5292_v24, %v837_v9  ;;  %v845_v11 = vsel %vm828_vm4, %v5294_v10, %v844_v53  ;;  %v852_v62 = vsel %vm828_vm4, %v5296_v47, %v851_v27  ;;  %v833_v14 = vsel %vm832_vm6, %v741_v26, %v831_v28  ;;  %v5614_v47 = vld [vmem:[#allocation21_spill] sm:$0xff]  ;;  %v5623_v26 = vld [vmem:[#allocation28_spill] sm:$0xff] }
  0xad   : > { %v839_v19 = vsel %vm830_vm5, %v5304_v8, %v838_v29  ;;  %v846_v48 = vsel %vm830_vm5, %v5306_v1, %v845_v11  ;;  %v853_v31 = vsel %vm830_vm5, %v723_v36, %v852_v62  ;;  %v855_v20 = vsel %vm820_vm0, %v5614_v47, %v5110_v46  ;;  %v5617_v8 = vld [vmem:[#allocation22_spill] sm:$0xff]  ;;  %v5620_v46 = vld [vmem:[#allocation27_spill] sm:$0xff]  ;;  %v5622_v36 = vld [vmem:[#allocation29_spill] sm:$0xff] }
  0xae   : > { %v840_v24 = vsel %vm832_vm6, %v747_v44, %v839_v19  ;;  %v847_v34 = vsel %vm832_vm6, %v753_v43, %v846_v48  ;;  %v854_v10 = vsel %vm832_vm6, %v759_v60, %v853_v31  ;;  %v856_v51 = vsel %vm822_vm1, %v5615_v12, %v855_v20  ;;  %v411_v43 = vld [vmem:[#allocation2 + $0x20] sm:$0xff] }
  0xaf   : > { %v862_v49 = vsel %vm820_vm0, %v5617_v8, %v5616_v2  ;;  %v875_v1 = vadd.f32 %v833_v14, %v406_v15  ;;  %v876_v33 = vadd.f32 %v840_v24, %v407_v16  ;;  %v857_v42 = vsel %vm824_vm2, %v5618_v5, %v856_v51 }
  0xb0   : > { %v863_v4 = vsel %vm822_vm1, %v5619_v18, %v862_v49  ;;  %v877_v54 = vadd.f32 %v847_v34, %v408_v7  ;;  %v878_v37 = vadd.f32 %v854_v10, %v409_v45  ;;  %v771_v23 = vadd.f32 %v770_v25, %v5340_v58  ;;  %v5624_v58 = vld [vmem:[#allocation30_spill] sm:$0xff] }
  0xb1   : > { %v858_v57 = vsel %vm826_vm3, %v5620_v46, %v857_v42  ;;  %v864_v30 = vsel %vm824_vm2, %v5621_v55, %v863_v4  ;;  %881 = vst [vmem:[#allocation2 + $0x28] sm:$0xff] %v875_v1 }
  0xb2   : > { %v859_v3 = vsel %vm828_vm4, %v5622_v36, %v858_v57  ;;  %v865_v44 = vsel %vm826_vm3, %v5623_v26, %v864_v30  ;;  %882 = vst [vmem:[#allocation2 + $0x10] sm:$0xff] %v876_v33 }
  0xb3   : > { %v860_v60 = vsel %vm830_vm5, %v5342_v32, %v859_v3  ;;  %v866_v25 = vsel %vm828_vm4, %v5624_v58, %v865_v44  ;;  %883 = vst [vmem:[#allocation2 + $0x8] sm:$0xff] %v877_v54 }
  0xb4   : > { %v861_v22 = vsel %vm832_vm6, %v765_v17, %v860_v60  ;;  %v867_v13 = vsel %vm830_vm5, %v5344_v39, %v866_v25  ;;  %884 = vst [vmem:[#allocation2] sm:$0xff] %v878_v37  ;;  %890 = sbr.rel (%p3089_p1) target bundleno = 695 (0x2b7), region = 80 }
  0xb5   : > { %v868_v59 = vsel %vm832_vm6, %v771_v23, %v867_v13  ;;  %v879_v6 = vadd.f32 %v861_v22, %v410_v61 }
  0xb6   : > { %v880_v21 = vadd.f32 %v868_v59, %v411_v43 }
  0xb7   : > { %885 = vst [vmem:[#allocation2 + $0x18] sm:$0xff] %v879_v6 }
  0xb8   : > { %886 = vst [vmem:[#allocation2 + $0x20] sm:$0xff] %v880_v21 }
  0xb9   : > { %v3204_v32 = vld [vmem:[#allocation9 + $0xe0] sm:$0xf]  ;;  %v4340_v38 = vld [vmem:[#allocation9 + $0xec] sm:$0xf0]  ;;  %v4338_v52 = vld [vmem:[#allocation9 + $0xe4] sm:$0xf] }
  0xba   : > { %v3205_v0 = vor.u32 %v4340_v38, %v3204_v32  ;;  %v3206_v35 = vld [vmem:[#allocation9 + $0xf0] sm:$0xf0]  ;;  %v3212_v63 = vld [vmem:[#allocation9 + $0xe8] sm:$0xf]  ;;  %v4341_v17 = vld [vmem:[#allocation9 + $0xf4] sm:$0xf0] }
  0xbb   : > { %v3209_v56 = vor.u32 %v4338_v52, %v3206_v35  ;;  %v3213_v50 = vor.u32 %v4341_v17, %v3212_v63  ;;  %v4339_v39 = vld [vmem:[#allocation9 + $0xec] sm:$0xf]  ;;  %v3214_v41 = vld [vmem:[#allocation9 + $0xf8] sm:$0xf0]  ;;  %v3188_v40 = vld [vmem:[#allocation9 + $0xc0] sm:$0xf] }
  0xbc   : > { %1289 = vmatpush.bf16.msra.mxu0 %v3205_v0  ;;  %v3217_v9 = vor.u32 %v4339_v39, %v3214_v41  ;;  %v4336_v53 = vld [vmem:[#allocation9 + $0xcc] sm:$0xf0]  ;;  %v4334_v27 = vld [vmem:[#allocation9 + $0xc4] sm:$0xf]  ;;  %v3190_v15 = vld [vmem:[#allocation9 + $0xd0] sm:$0xf0] }
  0xbd   : > { %1302 = vmatpush.bf16.msra.mxu1 %v3209_v56  ;;  %1315 = vmatpush.bf16.msra.mxu2 %v3213_v50  ;;  %v3189_v16 = vor.u32 %v4336_v53, %v3188_v40  ;;  %v3193_v28 = vor.u32 %v4334_v27, %v3190_v15  ;;  %v3196_v29 = vld [vmem:[#allocation9 + $0xc8] sm:$0xf]  ;;  %v4337_v11 = vld [vmem:[#allocation9 + $0xd4] sm:$0xf0]  ;;  %v4335_v62 = vld [vmem:[#allocation9 + $0xcc] sm:$0xf] }
  0xbe   : > { %1328 = vmatpush.bf16.msra.mxu3 %v3217_v9  ;;  %v3197_v7 = vor.u32 %v4337_v11, %v3196_v29  ;;  %v3198_v45 = vld [vmem:[#allocation9 + $0xd8] sm:$0xf0]  ;;  %v3172_v14 = vld [vmem:[#allocation9 + $0xa0] sm:$0xf]  ;;  %v4332_v19 = vld [vmem:[#allocation9 + $0xac] sm:$0xf0] }
  0xbf   : > { %v3201_v48 = vor.u32 %v4335_v62, %v3198_v45  ;;  %v4330_v31 = vld [vmem:[#allocation9 + $0xa4] sm:$0xf]  ;;  %v3174_v24 = vld [vmem:[#allocation9 + $0xb0] sm:$0xf0]  ;;  %v3180_v34 = vld [vmem:[#allocation9 + $0xa8] sm:$0xf]  ;;  %v3173_v10 = vor.u32 %v4332_v19, %v3172_v14 }
  0xc0   : > { %1290 = vmatpush.bf16.msra.mxu0 %v3189_v16  ;;  %v4333_v47 = vld [vmem:[#allocation9 + $0xb4] sm:$0xf0]  ;;  %v4331_v20 = vld [vmem:[#allocation9 + $0xac] sm:$0xf]  ;;  %v3182_v12 = vld [vmem:[#allocation9 + $0xb8] sm:$0xf0]  ;;  %v3177_v51 = vor.u32 %v4330_v31, %v3174_v24 }
  0xc1   : > { %1303 = vmatpush.bf16.msra.mxu1 %v3193_v28  ;;  %1316 = vmatpush.bf16.msra.mxu2 %v3197_v7  ;;  %v3181_v2 = vor.u32 %v4333_v47, %v3180_v34  ;;  %v3156_v8 = vld [vmem:[#allocation9 + $0x80] sm:$0xf]  ;;  %v4328_v49 = vld [vmem:[#allocation9 + $0x8c] sm:$0xf0]  ;;  %v4326_v1 = vld [vmem:[#allocation9 + $0x84] sm:$0xf]  ;;  %v3185_v33 = vor.u32 %v4331_v20, %v3182_v12 }
  0xc2   : > { %1329 = vmatpush.bf16.msra.mxu3 %v3201_v48  ;;  %v3158_v5 = vld [vmem:[#allocation9 + $0x90] sm:$0xf0]  ;;  %v3164_v42 = vld [vmem:[#allocation9 + $0x88] sm:$0xf]  ;;  %v4329_v18 = vld [vmem:[#allocation9 + $0x94] sm:$0xf0]  ;;  %v3157_v37 = vor.u32 %v4328_v49, %v3156_v8 }
  0xc3   : > { %v4327_v4 = vld [vmem:[#allocation9 + $0x8c] sm:$0xf]  ;;  %v3166_v54 = vld [vmem:[#allocation9 + $0x98] sm:$0xf0]  ;;  %v3161_v23 = vor.u32 %v4326_v1, %v3158_v5  ;;  %v3165_v46 = vor.u32 %v4329_v18, %v3164_v42  ;;  %v3140_v57 = vld [vmem:[#allocation9 + $0x60] sm:$0xf] }
  0xc4   : > { %1291 = vmatpush.bf16.msra.mxu0 %v3173_v10  ;;  %v4324_v55 = vld [vmem:[#allocation9 + $0x6c] sm:$0xf0]  ;;  %v4322_v30 = vld [vmem:[#allocation9 + $0x64] sm:$0xf]  ;;  %v3169_v61 = vor.u32 %v4327_v4, %v3166_v54  ;;  %v3142_v36 = vld [vmem:[#allocation9 + $0x70] sm:$0xf0] }
  0xc5   : > { %1304 = vmatpush.bf16.msra.mxu1 %v3177_v51  ;;  %1317 = vmatpush.bf16.msra.mxu2 %v3181_v2  ;;  %v3148_v3 = vld [vmem:[#allocation9 + $0x68] sm:$0xf]  ;;  %v4325_v26 = vld [vmem:[#allocation9 + $0x74] sm:$0xf0]  ;;  %v4323_v44 = vld [vmem:[#allocation9 + $0x6c] sm:$0xf]  ;;  %v3141_v60 = vor.u32 %v4324_v55, %v3140_v57  ;;  %v3145_v58 = vor.u32 %v4322_v30, %v3142_v36 }
  0xc6   : > { %1330 = vmatpush.bf16.msra.mxu3 %v3185_v33  ;;  %v3150_v43 = vld [vmem:[#allocation9 + $0x78] sm:$0xf0]  ;;  %v3149_v25 = vor.u32 %v4325_v26, %v3148_v3  ;;  %v3124_v22 = vld [vmem:[#allocation9 + $0x40] sm:$0xf]  ;;  %v4320_v13 = vld [vmem:[#allocation9 + $0x4c] sm:$0xf0] }
  0xc7   : > { %v4318_v59 = vld [vmem:[#allocation9 + $0x44] sm:$0xf]  ;;  %v3153_v6 = vor.u32 %v4323_v44, %v3150_v43  ;;  %v3126_v21 = vld [vmem:[#allocation9 + $0x50] sm:$0xf0]  ;;  %v3132_v32 = vld [vmem:[#allocation9 + $0x48] sm:$0xf]  ;;  %v3125_v35 = vor.u32 %v4320_v13, %v3124_v22 }
  0xc8   : > { %1292 = vmatpush.bf16.msra.mxu0 %v3157_v37  ;;  %v4321_v38 = vld [vmem:[#allocation9 + $0x54] sm:$0xf0]  ;;  %v4319_v52 = vld [vmem:[#allocation9 + $0x4c] sm:$0xf]  ;;  %v3134_v0 = vld [vmem:[#allocation9 + $0x58] sm:$0xf0]  ;;  %v3129_v63 = vor.u32 %v4318_v59, %v3126_v21 }
  0xc9   : > { %1305 = vmatpush.bf16.msra.mxu1 %v3161_v23  ;;  %1318 = vmatpush.bf16.msra.mxu2 %v3165_v46  ;;  %v3133_v17 = vor.u32 %v4321_v38, %v3132_v32  ;;  %v3108_v56 = vld [vmem:[#allocation9 + $0x20] sm:$0xf]  ;;  %v4316_v50 = vld [vmem:[#allocation9 + $0x2c] sm:$0xf0]  ;;  %v4314_v39 = vld [vmem:[#allocation9 + $0x24] sm:$0xf]  ;;  %v3137_v41 = vor.u32 %v4319_v52, %v3134_v0 }
  0xca   : > { %1331 = vmatpush.bf16.msra.mxu3 %v3169_v61  ;;  %v3110_v40 = vld [vmem:[#allocation9 + $0x30] sm:$0xf0]  ;;  %v3116_v9 = vld [vmem:[#allocation9 + $0x28] sm:$0xf]  ;;  %v4317_v53 = vld [vmem:[#allocation9 + $0x34] sm:$0xf0]  ;;  %v3109_v16 = vor.u32 %v4316_v50, %v3108_v56 }
  0xcb   : > { %v4315_v27 = vld [vmem:[#allocation9 + $0x2c] sm:$0xf]  ;;  %v3118_v15 = vld [vmem:[#allocation9 + $0x38] sm:$0xf0]  ;;  %v3092_v28 = vld [vmem:[#allocation9] sm:$0xf]  ;;  %v3113_v11 = vor.u32 %v4314_v39, %v3110_v40  ;;  %v3117_v62 = vor.u32 %v4317_v53, %v3116_v9 }
  0xcc   : > { %1293 = vmatpush.bf16.msra.mxu0 %v3141_v60  ;;  %v4312_v29 = vld [vmem:[#allocation9 + $0xc] sm:$0xf0]  ;;  %v4310_v7 = vld [vmem:[#allocation9 + $0x4] sm:$0xf]  ;;  %v3094_v45 = vld [vmem:[#allocation9 + $0x10] sm:$0xf0]  ;;  %v3121_v19 = vor.u32 %v4315_v27, %v3118_v15 }
  0xcd   : > { %1306 = vmatpush.bf16.msra.mxu1 %v3145_v58  ;;  %1319 = vmatpush.bf16.msra.mxu2 %v3149_v25  ;;  %v3100_v14 = vld [vmem:[#allocation9 + $0x8] sm:$0xf]  ;;  %v4313_v48 = vld [vmem:[#allocation9 + $0x14] sm:$0xf0]  ;;  %v4311_v31 = vld [vmem:[#allocation9 + $0xc] sm:$0xf]  ;;  %v3093_v20 = vor.u32 %v4312_v29, %v3092_v28  ;;  %v3097_v8 = vor.u32 %v4310_v7, %v3094_v45 }
  0xce   : > { %1332 = vmatpush.bf16.msra.mxu3 %v3153_v6  ;;  %v3102_v24 = vld [vmem:[#allocation9 + $0x18] sm:$0xf0]  ;;  %v3332_v34 = vld [vmem:[#allocation8 + $0xe0] sm:$0xf]  ;;  %v4148_v10 = vld [vmem:[#allocation8 + $0xec] sm:$0xf0]  ;;  %v3101_v49 = vor.u32 %v4313_v48, %v3100_v14 }
  0xcf   : > { %v3460_v47 = vld [vmem:[#allocation8 + $0x1e0] sm:$0xf]  ;;  %v4180_v12 = vld [vmem:[#allocation8 + $0x1ec] sm:$0xf0]  ;;  %v3105_v5 = vor.u32 %v4311_v31, %v3102_v24  ;;  %v3333_v42 = vor.u32 %v4148_v10, %v3332_v34  ;;  %v903_v3 = vld [vmem:[#allocation6] sm:$0xff] }
  0xd0   : > { %1294 = vmatpush.bf16.msra.mxu0 %v3125_v35  ;;  %v3588_v51 = vld [vmem:[#allocation8 + $0x2e0] sm:$0xf]  ;;  %v4212_v2 = vld [vmem:[#allocation8 + $0x2ec] sm:$0xf0]  ;;  %v3461_v18 = vor.u32 %v4180_v12, %v3460_v47  ;;  %v904_v44 = vpack.c.bf16 %v903_v3, %v903_v3 }
  0xd1   : > { %1307 = vmatpush.bf16.msra.mxu1 %v3129_v63  ;;  %1320 = vmatpush.bf16.msra.mxu2 %v3133_v17  ;;  %v3716_v1 = vld [vmem:[#allocation8 + $0x3e0] sm:$0xf]  ;;  %v4244_v33 = vld [vmem:[#allocation8 + $0x3ec] sm:$0xf0]  ;;  %v3589_v4 = vor.u32 %v4212_v2, %v3588_v51 }
  0xd2   : > { %1333 = vmatpush.bf16.msra.mxu3 %v3137_v41  ;;  %v3316_v54 = vld [vmem:[#allocation8 + $0xc0] sm:$0xf]  ;;  %v4144_v37 = vld [vmem:[#allocation8 + $0xcc] sm:$0xf0]  ;;  %v3717_v46 = vor.u32 %v4244_v33, %v3716_v1 }
  0xd3   : > { %v3444_v23 = vld [vmem:[#allocation8 + $0x1c0] sm:$0xf]  ;;  %v4176_v57 = vld [vmem:[#allocation8 + $0x1cc] sm:$0xf0]  ;;  %v3317_v26 = vor.u32 %v4144_v37, %v3316_v54 }
  0xd4   : > { %1295 = vmatpush.bf16.msra.mxu0 %v3109_v16  ;;  %v3572_v55 = vld [vmem:[#allocation8 + $0x2c0] sm:$0xf]  ;;  %v4208_v30 = vld [vmem:[#allocation8 + $0x2cc] sm:$0xf0]  ;;  %v3445_v43 = vor.u32 %v4176_v57, %v3444_v23 }
  0xd5   : > { %1308 = vmatpush.bf16.msra.mxu1 %v3113_v11  ;;  %1321 = vmatpush.bf16.msra.mxu2 %v3117_v62  ;;  %v3700_v61 = vld [vmem:[#allocation8 + $0x3c0] sm:$0xf]  ;;  %v4240_v36 = vld [vmem:[#allocation8 + $0x3cc] sm:$0xf0]  ;;  %v3573_v60 = vor.u32 %v4208_v30, %v3572_v55 }
  0xd6   : > { %1334 = vmatpush.bf16.msra.mxu3 %v3121_v19  ;;  %v3300_v58 = vld [vmem:[#allocation8 + $0xa0] sm:$0xf]  ;;  %v4140_v25 = vld [vmem:[#allocation8 + $0xac] sm:$0xf0]  ;;  %v3701_v13 = vor.u32 %v4240_v36, %v3700_v61 }
  0xd7   : > { %v3428_v22 = vld [vmem:[#allocation8 + $0x1a0] sm:$0xf]  ;;  %v4172_v59 = vld [vmem:[#allocation8 + $0x1ac] sm:$0xf0]  ;;  %v3301_v52 = vor.u32 %v4140_v25, %v3300_v58 }
  0xd8   : > { %1296 = vmatpush.bf16.msra.mxu0 %v3093_v20  ;;  %v3556_v6 = vld [vmem:[#allocation8 + $0x2a0] sm:$0xf]  ;;  %v4204_v21 = vld [vmem:[#allocation8 + $0x2ac] sm:$0xf0]  ;;  %v3429_v0 = vor.u32 %v4172_v59, %v3428_v22 }
  0xd9   : > { %1309 = vmatpush.bf16.msra.mxu1 %v3097_v8  ;;  %1322 = vmatpush.bf16.msra.mxu2 %v3101_v49  ;;  %v3684_v32 = vld [vmem:[#allocation8 + $0x3a0] sm:$0xf]  ;;  %v4236_v38 = vld [vmem:[#allocation8 + $0x3ac] sm:$0xf0]  ;;  %v3557_v35 = vor.u32 %v4204_v21, %v3556_v6 }
  0xda   : > { %1335 = vmatpush.bf16.msra.mxu3 %v3105_v5  ;;  %v3284_v63 = vld [vmem:[#allocation8 + $0x80] sm:$0xf]  ;;  %v4136_v17 = vld [vmem:[#allocation8 + $0x8c] sm:$0xf0]  ;;  %v3685_v50 = vor.u32 %v4236_v38, %v3684_v32 }
  0xdb   : > { %1297 = vmatmul.bf16.vlgmr.msra.gmra.mxu0 %v904_v44  ;;  %v3412_v56 = vld [vmem:[#allocation8 + $0x180] sm:$0xf]  ;;  %v4168_v39 = vld [vmem:[#allocation8 + $0x18c] sm:$0xf0]  ;;  %v3285_v27 = vor.u32 %v4136_v17, %v3284_v63 }
  0xdc   : > { %2301 = vmatpush.bf16.msrb.mxu0 %v3333_v42  ;;  %1323 = vmatmul.bf16.vlgmr.msra.gmra.mxu2 %v904_v44  ;;  %v3540_v41 = vld [vmem:[#allocation8 + $0x280] sm:$0xf]  ;;  %v4200_v40 = vld [vmem:[#allocation8 + $0x28c] sm:$0xf0]  ;;  %v3413_v15 = vor.u32 %v4168_v39, %v3412_v56  ;;  %v4178_v56 = vld [vmem:[#allocation8 + $0x1e4] sm:$0xf] }
  0xdd   : > { %2314 = vmatpush.bf16.msrb.mxu1 %v3461_v18  ;;  %2327 = vmatpush.bf16.msrb.mxu2 %v3589_v4  ;;  %v3668_v9 = vld [vmem:[#allocation8 + $0x380] sm:$0xf]  ;;  %v4232_v53 = vld [vmem:[#allocation8 + $0x38c] sm:$0xf0]  ;;  %v3541_v16 = vor.u32 %v4200_v40, %v3540_v41 }
  0xde   : > { %2340 = vmatpush.bf16.msrb.mxu3 %v3717_v46  ;;  %1310 = vmatmul.bf16.vlgmr.msra.gmra.mxu1 %v904_v44  ;;  %v3268_v28 = vld [vmem:[#allocation8 + $0x60] sm:$0xf]  ;;  %v4132_v29 = vld [vmem:[#allocation8 + $0x6c] sm:$0xf0]  ;;  %v3669_v62 = vor.u32 %v4232_v53, %v3668_v9  ;;  %v892_v53 = vld [vmem:[#allocation2 + $0x10] sm:$0xff] }
  0xdf   : > { %1336 = vmatmul.bf16.vlgmr.msra.gmra.mxu3 %v904_v44  ;;  %v3396_v11 = vld [vmem:[#allocation8 + $0x160] sm:$0xf]  ;;  %v4164_v7 = vld [vmem:[#allocation8 + $0x16c] sm:$0xf0]  ;;  %v3269_v31 = vor.u32 %v4132_v29, %v3268_v28 }
  0xe0   : > { %2302 = vmatpush.bf16.msrb.mxu0 %v3317_v26  ;;  %v3524_v45 = vld [vmem:[#allocation8 + $0x260] sm:$0xf]  ;;  %v4196_v14 = vld [vmem:[#allocation8 + $0x26c] sm:$0xf0]  ;;  %v3397_v24 = vor.u32 %v4164_v7, %v3396_v11 }
  0xe1   : > { %2315 = vmatpush.bf16.msrb.mxu1 %v3445_v43  ;;  %2328 = vmatpush.bf16.msrb.mxu2 %v3573_v60  ;;  %v3652_v19 = vld [vmem:[#allocation8 + $0x360] sm:$0xf]  ;;  %v4228_v48 = vld [vmem:[#allocation8 + $0x36c] sm:$0xf0]  ;;  %v3525_v34 = vor.u32 %v4196_v14, %v3524_v45  ;;  %v4142_v14 = vld [vmem:[#allocation8 + $0xc4] sm:$0xf] }
  0xe2   : > { %2341 = vmatpush.bf16.msrb.mxu3 %v3701_v13  ;;  %v3252_v10 = vld [vmem:[#allocation8 + $0x40] sm:$0xf]  ;;  %v4128_v47 = vld [vmem:[#allocation8 + $0x4c] sm:$0xf0]  ;;  %v3653_v12 = vor.u32 %v4228_v48, %v3652_v19  ;;  %v3318_v19 = vld [vmem:[#allocation8 + $0xd0] sm:$0xf0] }
  0xe3   : > { %v3380_v20 = vld [vmem:[#allocation8 + $0x140] sm:$0xf]  ;;  %v4160_v51 = vld [vmem:[#allocation8 + $0x14c] sm:$0xf0]  ;;  %v3253_v33 = vor.u32 %v4128_v47, %v3252_v10 }
  0xe4   : > { %2303 = vmatpush.bf16.msrb.mxu0 %v3301_v52  ;;  %v3508_v2 = vld [vmem:[#allocation8 + $0x240] sm:$0xf]  ;;  %v4192_v8 = vld [vmem:[#allocation8 + $0x24c] sm:$0xf0]  ;;  %v3381_v5 = vor.u32 %v4160_v51, %v3380_v20 }
  0xe5   : > { %2316 = vmatpush.bf16.msrb.mxu1 %v3429_v0  ;;  %2329 = vmatpush.bf16.msrb.mxu2 %v3557_v35  ;;  %v3636_v49 = vld [vmem:[#allocation8 + $0x340] sm:$0xf]  ;;  %v4224_v1 = vld [vmem:[#allocation8 + $0x34c] sm:$0xf0]  ;;  %v3509_v42 = vor.u32 %v4192_v8, %v3508_v2  ;;  %v4146_v0 = vld [vmem:[#allocation8 + $0xe4] sm:$0xf] }
  0xe6   : > { %2342 = vmatpush.bf16.msrb.mxu3 %v3685_v50  ;;  %v3236_v18 = vld [vmem:[#allocation8 + $0x20] sm:$0xf]  ;;  %v4124_v4 = vld [vmem:[#allocation8 + $0x2c] sm:$0xf0]  ;;  %v3637_v37 = vor.u32 %v4224_v1, %v3636_v49  ;;  %v3334_v35 = vld [vmem:[#allocation8 + $0xf0] sm:$0xf0] }
  0xe7   : > { %v3364_v54 = vld [vmem:[#allocation8 + $0x120] sm:$0xf]  ;;  %v4156_v23 = vld [vmem:[#allocation8 + $0x12c] sm:$0xf0]  ;;  %v3237_v61 = vor.u32 %v4124_v4, %v3236_v18  ;;  %v3462_v50 = vld [vmem:[#allocation8 + $0x1f0] sm:$0xf0] }
  0xe8   : > { %2304 = vmatpush.bf16.msrb.mxu0 %v3285_v27  ;;  %v3492_v46 = vld [vmem:[#allocation8 + $0x220] sm:$0xf]  ;;  %v4188_v57 = vld [vmem:[#allocation8 + $0x22c] sm:$0xf0]  ;;  %v3365_v26 = vor.u32 %v4156_v23, %v3364_v54  ;;  %v894_v27 = vld [vmem:[#allocation2] sm:$0xff] }
  0xe9   : > { %2317 = vmatpush.bf16.msrb.mxu1 %v3413_v15  ;;  %2330 = vmatpush.bf16.msrb.mxu2 %v3541_v16  ;;  %v3620_v55 = vld [vmem:[#allocation8 + $0x320] sm:$0xf]  ;;  %v4220_v30 = vld [vmem:[#allocation8 + $0x32c] sm:$0xf0]  ;;  %v3493_v44 = vor.u32 %v4188_v57, %v3492_v46  ;;  %v3337_v16 = vor.u32 %v4146_v0, %v3334_v35  ;;  %v5438_v10 = vpack.c.bf16 %v894_v27, %v894_v27  ;;  %v3430_v18 = vld [vmem:[#allocation8 + $0x1b0] sm:$0xf0] }
  0xea   : > { %2343 = vmatpush.bf16.msrb.mxu3 %v3669_v62  ;;  %v3220_v36 = vld [vmem:[#allocation8] sm:$0xf]  ;;  %v4120_v3 = vld [vmem:[#allocation8 + $0xc] sm:$0xf0]  ;;  %v3621_v25 = vor.u32 %v4220_v30, %v3620_v55  ;;  %v3465_v62 = vor.u32 %v4178_v56, %v3462_v50 }
  0xeb   : > { %v3348_v43 = vld [vmem:[#allocation8 + $0x100] sm:$0xf]  ;;  %v4152_v60 = vld [vmem:[#allocation8 + $0x10c] sm:$0xf0]  ;;  %v3221_v38 = vor.u32 %v4120_v3, %v3220_v36  ;;  %v3286_v36 = vld [vmem:[#allocation8 + $0x90] sm:$0xf0] }
  0xec   : > { %2305 = vmatpush.bf16.msrb.mxu0 %v3269_v31  ;;  %v3476_v58 = vld [vmem:[#allocation8 + $0x200] sm:$0xf]  ;;  %v4184_v22 = vld [vmem:[#allocation8 + $0x20c] sm:$0xf0]  ;;  %v3349_v63 = vor.u32 %v4152_v60, %v3348_v43  ;;  %v5436_v31 = vpack.c.bf16 %v892_v53, %v892_v53  ;;  %v4166_v3 = vld [vmem:[#allocation8 + $0x184] sm:$0xf] }
  0xed   : > { %2318 = vmatpush.bf16.msrb.mxu1 %v3397_v24  ;;  %2331 = vmatpush.bf16.msrb.mxu2 %v3525_v34  ;;  %v3604_v13 = vld [vmem:[#allocation8 + $0x300] sm:$0xf]  ;;  %v4216_v59 = vld [vmem:[#allocation8 + $0x30c] sm:$0xf0]  ;;  %v3477_v17 = vor.u32 %v4184_v22, %v3476_v58  ;;  %v4174_v24 = vld [vmem:[#allocation8 + $0x1c4] sm:$0xf] }
  0xee   : > { %2344 = vmatpush.bf16.msrb.mxu3 %v3653_v12  ;;  %v3844_v6 = vld [vmem:[#allocation8 + $0x4e0] sm:$0xf]  ;;  %v4276_v21 = vld [vmem:[#allocation8 + $0x4ec] sm:$0xf0]  ;;  %v3605_v41 = vor.u32 %v4216_v59, %v3604_v13  ;;  %v3446_v34 = vld [vmem:[#allocation8 + $0x1d0] sm:$0xf0]  ;;  %v3321_v12 = vor.u32 %v4142_v14, %v3318_v19 }
  0xef   : > { %v3972_v32 = vld [vmem:[#allocation8 + $0x5e0] sm:$0xf]  ;;  %v4308_v52 = vld [vmem:[#allocation8 + $0x5ec] sm:$0xf0]  ;;  %v3845_v40 = vor.u32 %v4276_v21, %v3844_v6  ;;  %v3449_v49 = vor.u32 %v4174_v24, %v3446_v34  ;;  %v4130_v6 = vld [vmem:[#allocation8 + $0x64] sm:$0xf] }
  0xf0   : > { %2306 = vmatpush.bf16.msrb.mxu0 %v3253_v33  ;;  %v891_v39 = vld [vmem:[#allocation2 + $0x28] sm:$0xff]  ;;  %v3973_v15 = vor.u32 %v4308_v52, %v3972_v32  ;;  %v3828_v28 = vld [vmem:[#allocation8 + $0x4c0] sm:$0xf]  ;;  %v4138_v33 = vld [vmem:[#allocation8 + $0xa4] sm:$0xf] }
  0xf1   : > { %2319 = vmatpush.bf16.msrb.mxu1 %v3381_v5  ;;  %2332 = vmatpush.bf16.msrb.mxu2 %v3509_v42  ;;  %v893_v9 = vld [vmem:[#allocation2 + $0x8] sm:$0xff]  ;;  %v3956_v11 = vld [vmem:[#allocation8 + $0x5c0] sm:$0xf]  ;;  %v5432_v7 = vpack.c.bf16 %v891_v39, %v891_v39  ;;  %v4170_v42 = vld [vmem:[#allocation8 + $0x1a4] sm:$0xf] }
  0xf2   : > { %2345 = vmatpush.bf16.msrb.mxu3 %v3637_v37  ;;  %v4272_v29 = vld [vmem:[#allocation8 + $0x4cc] sm:$0xf0]  ;;  %v5434_v48 = vpack.c.bf16 %v893_v9, %v893_v9  ;;  %v3812_v51 = vld [vmem:[#allocation8 + $0x4a0] sm:$0xf]  ;;  %v3302_v5 = vld [vmem:[#allocation8 + $0xb0] sm:$0xf0]  ;;  %v3433_v55 = vor.u32 %v4170_v42, %v3430_v18 }
  0xf3   : > { %v4304_v45 = vld [vmem:[#allocation8 + $0x5cc] sm:$0xf0]  ;;  %v3829_v47 = vor.u32 %v4272_v29, %v3828_v28  ;;  %v3940_v8 = vld [vmem:[#allocation8 + $0x5a0] sm:$0xf]  ;;  %v3305_v37 = vor.u32 %v4138_v33, %v3302_v5  ;;  %v3270_v21 = vld [vmem:[#allocation8 + $0x70] sm:$0xf0] }
  0xf4   : > { %2307 = vmatpush.bf16.msrb.mxu0 %v3237_v61  ;;  %v3957_v20 = vor.u32 %v4304_v45, %v3956_v11  ;;  %v4268_v2 = vld [vmem:[#allocation8 + $0x4ac] sm:$0xf0]  ;;  %v3796_v23 = vld [vmem:[#allocation8 + $0x480] sm:$0xf]  ;;  %v4134_v61 = vld [vmem:[#allocation8 + $0x84] sm:$0xf]  ;;  %v3273_v35 = vor.u32 %v4130_v6, %v3270_v21 }
  0xf5   : > { %2320 = vmatpush.bf16.msrb.mxu1 %v3365_v26  ;;  %2333 = vmatpush.bf16.msrb.mxu2 %v3493_v44  ;;  %v4300_v1 = vld [vmem:[#allocation8 + $0x5ac] sm:$0xf0]  ;;  %v3813_v4 = vor.u32 %v4268_v2, %v3812_v51  ;;  %v3924_v57 = vld [vmem:[#allocation8 + $0x580] sm:$0xf]  ;;  %v3414_v26 = vld [vmem:[#allocation8 + $0x190] sm:$0xf0]  ;;  %v3289_v60 = vor.u32 %v4134_v61, %v3286_v36 }
  0xf6   : > { %2346 = vmatpush.bf16.msrb.mxu3 %v3621_v25  ;;  %v3941_v54 = vor.u32 %v4300_v1, %v3940_v8  ;;  %v4264_v46 = vld [vmem:[#allocation8 + $0x48c] sm:$0xf0]  ;;  %v3780_v58 = vld [vmem:[#allocation8 + $0x460] sm:$0xf]  ;;  %v3417_v13 = vor.u32 %v4166_v3, %v3414_v26  ;;  %v4162_v32 = vld [vmem:[#allocation8 + $0x164] sm:$0xf] }
  0xf7   : > { %v4296_v30 = vld [vmem:[#allocation8 + $0x58c] sm:$0xf0]  ;;  %v3797_v44 = vor.u32 %v4264_v46, %v3796_v23  ;;  %v3908_v22 = vld [vmem:[#allocation8 + $0x560] sm:$0xf]  ;;  %v4158_v9 = vld [vmem:[#allocation8 + $0x144] sm:$0xf] }
  0xf8   : > { %2308 = vmatpush.bf16.msrb.mxu0 %v3221_v38  ;;  %v3925_v43 = vor.u32 %v4296_v30, %v3924_v57  ;;  %v4260_v25 = vld [vmem:[#allocation8 + $0x46c] sm:$0xf0]  ;;  %v3398_v38 = vld [vmem:[#allocation8 + $0x170] sm:$0xf0]  ;;  %v3892_v56 = vld [vmem:[#allocation8 + $0x540] sm:$0xf] }
  0xf9   : > { %2321 = vmatpush.bf16.msrb.mxu1 %v3349_v63  ;;  %2334 = vmatpush.bf16.msrb.mxu2 %v3477_v17  ;;  %v4292_v59 = vld [vmem:[#allocation8 + $0x56c] sm:$0xf0]  ;;  %v3781_v52 = vor.u32 %v4260_v25, %v3780_v58  ;;  %v3764_v63 = vld [vmem:[#allocation8 + $0x440] sm:$0xf]  ;;  %v3401_v50 = vor.u32 %v4162_v32, %v3398_v38  ;;  %v3382_v53 = vld [vmem:[#allocation8 + $0x150] sm:$0xf0] }
  0xfa   : > { %2347 = vmatpush.bf16.msrb.mxu3 %v3605_v41  ;;  %v3909_v0 = vor.u32 %v4292_v59, %v3908_v22  ;;  %v4256_v17 = vld [vmem:[#allocation8 + $0x44c] sm:$0xf0]  ;;  %v4126_v41 = vld [vmem:[#allocation8 + $0x44] sm:$0xf]  ;;  %v3748_v28 = vld [vmem:[#allocation8 + $0x420] sm:$0xf] }
  0xfb   : > { %2309 = vmatmul.bf16.vlgmr.msrb.gmra.mxu0 %v5432_v7  ;;  %v4288_v39 = vld [vmem:[#allocation8 + $0x54c] sm:$0xf0]  ;;  %v3765_v27 = vor.u32 %v4256_v17, %v3764_v63  ;;  %v3876_v11 = vld [vmem:[#allocation8 + $0x520] sm:$0xf]  ;;  %v4122_v14 = vld [vmem:[#allocation8 + $0x24] sm:$0xf] }
  0xfc   : > { %2353 = vmatpush.bf16.msra.mxu0 %v3845_v40  ;;  %2335 = vmatmul.bf16.vlgmr.msrb.gmra.mxu2 %v5434_v48  ;;  %v3254_v40 = vld [vmem:[#allocation8 + $0x50] sm:$0xf0]  ;;  %v4252_v29 = vld [vmem:[#allocation8 + $0x42c] sm:$0xf0]  ;;  %v4154_v24 = vld [vmem:[#allocation8 + $0x124] sm:$0xf] }
  0xfd   : > { %2366 = vmatpush.bf16.msra.mxu1 %v3973_v15  ;;  %2379 = vmatpush.bf16.msra.mxu2 %v3337_v16  ;;  %v3893_v15 = vor.u32 %v4288_v39, %v3892_v56  ;;  %v3257_v16 = vor.u32 %v4126_v41, %v3254_v40  ;;  %v4284_v45 = vld [vmem:[#allocation8 + $0x52c] sm:$0xf0]  ;;  %v3238_v19 = vld [vmem:[#allocation8 + $0x30] sm:$0xf0]  ;;  %v3860_v8 = vld [vmem:[#allocation8 + $0x500] sm:$0xf] }
  0xfe   : > { %2392 = vmatpush.bf16.msra.mxu3 %v3465_v62  ;;  %2322 = vmatmul.bf16.vlgmr.msrb.gmra.mxu1 %v5436_v31  ;;  %v3385_v62 = vor.u32 %v4158_v9, %v3382_v53  ;;  %v3366_v34 = vld [vmem:[#allocation8 + $0x130] sm:$0xf0]  ;;  %v3877_v51 = vor.u32 %v4284_v45, %v3876_v11  ;;  %v3241_v2 = vor.u32 %v4122_v14, %v3238_v19  ;;  %v4118_v1 = vld [vmem:[#allocation8 + $0x4] sm:$0xf] }
  0xff   : > { %2348 = vmatmul.bf16.vlgmr.msrb.gmra.mxu3 %v5438_v10  ;;  %v3369_v33 = vor.u32 %v4154_v24, %v3366_v34  ;;  %v3222_v5 = vld [vmem:[#allocation8 + $0x10] sm:$0xf0]  ;;  %v4150_v42 = vld [vmem:[#allocation8 + $0x104] sm:$0xf] }
 0x100   : > { %2354 = vmatpush.bf16.msra.mxu0 %v3829_v47  ;;  %v3749_v47 = vor.u32 %v4252_v29, %v3748_v28  ;;  %v3350_v18 = vld [vmem:[#allocation8 + $0x110] sm:$0xf0]  ;;  %v4274_v57 = vld [vmem:[#allocation8 + $0x4e4] sm:$0xf]  ;;  %v3225_v61 = vor.u32 %v4118_v1, %v3222_v5 }
 0x101   : > { %2367 = vmatpush.bf16.msra.mxu1 %v3957_v20  ;;  %2380 = vmatpush.bf16.msra.mxu2 %v3321_v12  ;;  %v3732_v20 = vld [vmem:[#allocation8 + $0x400] sm:$0xf]  ;;  %v4248_v12 = vld [vmem:[#allocation8 + $0x40c] sm:$0xf0]  ;;  %v3718_v46 = vld [vmem:[#allocation8 + $0x3f0] sm:$0xf0] }
 0x102   : > { %2393 = vmatpush.bf16.msra.mxu3 %v3449_v49  ;;  %v4280_v49 = vld [vmem:[#allocation8 + $0x50c] sm:$0xf0]  ;;  %v3733_v23 = vor.u32 %v4248_v12, %v3732_v20  ;;  %v4306_v36 = vld [vmem:[#allocation8 + $0x5e4] sm:$0xf]  ;;  %v3974_v3 = vld [vmem:[#allocation8 + $0x5f0] sm:$0xf0] }
 0x103   : > { %v3861_v30 = vor.u32 %v4280_v49, %v3860_v8  ;;  %v895_v26 = vld [vmem:[#allocation2 + $0x18] sm:$0xff]  ;;  %v3977_v6 = vor.u32 %v4306_v36, %v3974_v3  ;;  %v3702_v32 = vld [vmem:[#allocation8 + $0x3d0] sm:$0xf0] }
 0x104   : > { %2355 = vmatpush.bf16.msra.mxu0 %v3813_v4  ;;  %v4210_v4 = vld [vmem:[#allocation8 + $0x2e4] sm:$0xf]  ;;  %v5444_v21 = vpack.c.bf16 %v895_v26, %v895_v26  ;;  %v3958_v63 = vld [vmem:[#allocation8 + $0x5d0] sm:$0xf0] }
 0x105   : > { %2368 = vmatpush.bf16.msra.mxu1 %v3941_v54  ;;  %2381 = vmatpush.bf16.msra.mxu2 %v3305_v37  ;;  %v3590_v54 = vld [vmem:[#allocation8 + $0x2f0] sm:$0xf0]  ;;  %v4242_v37 = vld [vmem:[#allocation8 + $0x3e4] sm:$0xf] }
 0x106   : > { %2394 = vmatpush.bf16.msra.mxu3 %v3433_v55  ;;  %v3846_v55 = vld [vmem:[#allocation8 + $0x4f0] sm:$0xf0]  ;;  %v3721_v58 = vor.u32 %v4242_v37, %v3718_v46  ;;  %v4206_v22 = vld [vmem:[#allocation8 + $0x2c4] sm:$0xf] }
 0x107   : > { %v3849_v25 = vor.u32 %v4274_v57, %v3846_v55  ;;  %v4238_v59 = vld [vmem:[#allocation8 + $0x3c4] sm:$0xf]  ;;  %v3558_v41 = vld [vmem:[#allocation8 + $0x2b0] sm:$0xf0] }
 0x108   : > { %2356 = vmatpush.bf16.msra.mxu0 %v3797_v44  ;;  %v3353_v44 = vor.u32 %v4150_v42, %v3350_v18  ;;  %v4270_v38 = vld [vmem:[#allocation8 + $0x4c4] sm:$0xf]  ;;  %v3705_v56 = vor.u32 %v4238_v59, %v3702_v32  ;;  %v3686_v53 = vld [vmem:[#allocation8 + $0x3b0] sm:$0xf0] }
 0x109   : > { %2369 = vmatpush.bf16.msra.mxu1 %v3925_v43  ;;  %2382 = vmatpush.bf16.msra.mxu2 %v3289_v60  ;;  %v3593_v43 = vor.u32 %v4210_v4, %v3590_v54  ;;  %v896_v60 = vld [vmem:[#allocation2 + $0x20] sm:$0xff]  ;;  %v4202_v39 = vld [vmem:[#allocation8 + $0x2a4] sm:$0xf]  ;;  %v3942_v28 = vld [vmem:[#allocation8 + $0x5b0] sm:$0xf0] }
 0x10a   : > { %2395 = vmatpush.bf16.msra.mxu3 %v3417_v13  ;;  %v3574_v13 = vld [vmem:[#allocation8 + $0x2d0] sm:$0xf0]  ;;  %v4234_v40 = vld [vmem:[#allocation8 + $0x3a4] sm:$0xf]  ;;  %v3561_v29 = vor.u32 %v4202_v39, %v3558_v41 }
 0x10b   : > { %v3577_v17 = vor.u32 %v4206_v22, %v3574_v13  ;;  %v3689_v11 = vor.u32 %v4234_v40, %v3686_v53  ;;  %v4198_v45 = vld [vmem:[#allocation8 + $0x284] sm:$0xf]  ;;  %v3542_v14 = vld [vmem:[#allocation8 + $0x290] sm:$0xf0] }
 0x10c   : > { %2357 = vmatpush.bf16.msra.mxu0 %v3781_v52  ;;  %v3830_v52 = vld [vmem:[#allocation8 + $0x4d0] sm:$0xf0]  ;;  %v4230_v19 = vld [vmem:[#allocation8 + $0x384] sm:$0xf] }
 0x10d   : > { %2370 = vmatpush.bf16.msra.mxu1 %v3909_v0  ;;  %2383 = vmatpush.bf16.msra.mxu2 %v3273_v35  ;;  %v5446_v0 = vpack.c.bf16 %v896_v60, %v896_v60  ;;  %v4302_v35 = vld [vmem:[#allocation8 + $0x5c4] sm:$0xf]  ;;  %v3670_v34 = vld [vmem:[#allocation8 + $0x390] sm:$0xf0] }
 0x10e   : > { %2396 = vmatpush.bf16.msra.mxu3 %v3401_v50  ;;  %v3833_v50 = vor.u32 %v4270_v38, %v3830_v52  ;;  %v3961_v9 = vor.u32 %v4302_v35, %v3958_v63  ;;  %v3798_v20 = vld [vmem:[#allocation8 + $0x490] sm:$0xf0]  ;;  %v4294_v12 = vld [vmem:[#allocation8 + $0x584] sm:$0xf]  ;;  %v3673_v8 = vor.u32 %v4230_v19, %v3670_v34  ;;  %v3596_v34 = vld [vmem:[#allocation8 + $0x2e8] sm:$0xf] }
 0x10f   : > { %v4194_v1 = vld [vmem:[#allocation8 + $0x264] sm:$0xf]  ;;  %v3654_v18 = vld [vmem:[#allocation8 + $0x370] sm:$0xf0] }
 0x110   : > { %2358 = vmatpush.bf16.msra.mxu0 %v3765_v27  ;;  %v4266_v27 = vld [vmem:[#allocation8 + $0x4a4] sm:$0xf]  ;;  %v3782_v54 = vld [vmem:[#allocation8 + $0x470] sm:$0xf0] }
 0x111   : > { %2371 = vmatpush.bf16.msra.mxu1 %v3893_v15  ;;  %2384 = vmatpush.bf16.msra.mxu2 %v3257_v16  ;;  %v3814_v15 = vld [vmem:[#allocation8 + $0x4b0] sm:$0xf0]  ;;  %v4298_v16 = vld [vmem:[#allocation8 + $0x5a4] sm:$0xf] }
 0x112   : > { %2397 = vmatpush.bf16.msra.mxu3 %v3385_v62  ;;  %v3817_v62 = vor.u32 %v4266_v27, %v3814_v15  ;;  %v3945_v24 = vor.u32 %v4298_v16, %v3942_v28  ;;  %v4226_v5 = vld [vmem:[#allocation8 + $0x364] sm:$0xf]  ;;  %v3638_v26 = vld [vmem:[#allocation8 + $0x350] sm:$0xf0] }
 0x113   : > { %v4258_v4 = vld [vmem:[#allocation8 + $0x464] sm:$0xf]  ;;  %v3657_v57 = vor.u32 %v4226_v5, %v3654_v18  ;;  %v3622_v52 = vld [vmem:[#allocation8 + $0x330] sm:$0xf0]  ;;  %v3324_v5 = vld [vmem:[#allocation8 + $0xc8] sm:$0xf] }
 0x114   : > { %2359 = vmatpush.bf16.msra.mxu0 %v3749_v47  ;;  %v4262_v47 = vld [vmem:[#allocation8 + $0x484] sm:$0xf]  ;;  %v3785_v55 = vor.u32 %v4258_v4, %v3782_v54  ;;  %v3750_v63 = vld [vmem:[#allocation8 + $0x430] sm:$0xf0]  ;;  %v3452_v18 = vld [vmem:[#allocation8 + $0x1c8] sm:$0xf] }
 0x115   : > { %2372 = vmatpush.bf16.msra.mxu1 %v3877_v51  ;;  %2385 = vmatpush.bf16.msra.mxu2 %v3241_v2  ;;  %v3926_v51 = vld [vmem:[#allocation8 + $0x590] sm:$0xf0]  ;;  %v3545_v2 = vor.u32 %v4198_v45, %v3542_v14  ;;  %v3801_v49 = vor.u32 %v4262_v47, %v3798_v20  ;;  %v4290_v37 = vld [vmem:[#allocation8 + $0x564] sm:$0xf]  ;;  %v4149_v45 = vld [vmem:[#allocation8 + $0xf4] sm:$0xf0] }
 0x116   : > { %2398 = vmatpush.bf16.msra.mxu3 %v3369_v33  ;;  %v3526_v33 = vld [vmem:[#allocation8 + $0x270] sm:$0xf0]  ;;  %v3929_v42 = vor.u32 %v4294_v12, %v3926_v51  ;;  %v4222_v36 = vld [vmem:[#allocation8 + $0x344] sm:$0xf]  ;;  %v3468_v14 = vld [vmem:[#allocation8 + $0x1e8] sm:$0xf] }
 0x117   : > { %v3529_v46 = vor.u32 %v4194_v1, %v3526_v33  ;;  %v4286_v60 = vld [vmem:[#allocation8 + $0x544] sm:$0xf]  ;;  %v3641_v22 = vor.u32 %v4222_v36, %v3638_v26  ;;  %v3478_v41 = vld [vmem:[#allocation8 + $0x210] sm:$0xf0]  ;;  %v4213_v47 = vld [vmem:[#allocation8 + $0x2f4] sm:$0xf0] }
 0x118   : > { %2360 = vmatpush.bf16.msra.mxu0 %v3733_v23  ;;  %v3910_v23 = vld [vmem:[#allocation8 + $0x570] sm:$0xf0]  ;;  %v4186_v59 = vld [vmem:[#allocation8 + $0x224] sm:$0xf]  ;;  %v3724_v51 = vld [vmem:[#allocation8 + $0x3e8] sm:$0xf]  ;;  %v3597_v33 = vor.u32 %v4213_v47, %v3596_v34 }
 0x119   : > { %2373 = vmatpush.bf16.msra.mxu1 %v3861_v30  ;;  %2386 = vmatpush.bf16.msra.mxu2 %v3225_v61  ;;  %v4190_v30 = vld [vmem:[#allocation8 + $0x244] sm:$0xf]  ;;  %v3510_v61 = vld [vmem:[#allocation8 + $0x250] sm:$0xf0]  ;;  %v3913_v3 = vor.u32 %v4290_v37, %v3910_v23  ;;  %v4177_v54 = vld [vmem:[#allocation8 + $0x1d4] sm:$0xf0] }
 0x11a   : > { %2399 = vmatpush.bf16.msra.mxu3 %v3353_v44  ;;  %v4254_v44 = vld [vmem:[#allocation8 + $0x444] sm:$0xf]  ;;  %v3606_v27 = vld [vmem:[#allocation8 + $0x310] sm:$0xf0]  ;;  %v3580_v37 = vld [vmem:[#allocation8 + $0x2c8] sm:$0xf] }
 0x11b   : > { %2361 = vmatmul.bf16.vlgmr.msra.gmra.mxu0 %v5444_v21  ;;  %v4218_v32 = vld [vmem:[#allocation8 + $0x324] sm:$0xf]  ;;  %v3734_v28 = vld [vmem:[#allocation8 + $0x410] sm:$0xf0]  ;;  %v4209_v23 = vld [vmem:[#allocation8 + $0x2d4] sm:$0xf0] }
 0x11c   : > { %2405 = vmatpush.bf16.msrb.mxu0 %v3593_v43  ;;  %2387 = vmatmul.bf16.vlgmr.msra.gmra.mxu2 %v5432_v7  ;;  %v3766_v43 = vld [vmem:[#allocation8 + $0x450] sm:$0xf0]  ;;  %v4250_v35 = vld [vmem:[#allocation8 + $0x424] sm:$0xf]  ;;  %v3625_v40 = vor.u32 %v4218_v32, %v3622_v52  ;;  %v3308_v36 = vld [vmem:[#allocation8 + $0xa8] sm:$0xf] }
 0x11d   : > { %2418 = vmatpush.bf16.msrb.mxu1 %v3721_v58  ;;  %2431 = vmatpush.bf16.msrb.mxu2 %v3849_v25  ;;  %v3894_v58 = vld [vmem:[#allocation8 + $0x550] sm:$0xf0]  ;;  %v3513_v25 = vor.u32 %v4190_v30, %v3510_v61  ;;  %v3769_v13 = vor.u32 %v4254_v44, %v3766_v43  ;;  %v4182_v39 = vld [vmem:[#allocation8 + $0x204] sm:$0xf]  ;;  %v3453_v30 = vor.u32 %v4177_v54, %v3452_v18  ;;  %v3436_v26 = vld [vmem:[#allocation8 + $0x1a8] sm:$0xf] }
 0x11e   : > { %2444 = vmatpush.bf16.msrb.mxu3 %v3977_v6  ;;  %2374 = vmatmul.bf16.vlgmr.msra.gmra.mxu1 %v5446_v0  ;;  %v3494_v6 = vld [vmem:[#allocation8 + $0x230] sm:$0xf0]  ;;  %v3897_v38 = vor.u32 %v4286_v60, %v3894_v58  ;;  %v4214_v53 = vld [vmem:[#allocation8 + $0x304] sm:$0xf]  ;;  %v3481_v19 = vor.u32 %v4182_v39, %v3478_v41  ;;  %v3581_v61 = vor.u32 %v4209_v23, %v3580_v37  ;;  %v4173_v43 = vld [vmem:[#allocation8 + $0x1b4] sm:$0xf0] }
 0x11f   : > { %2400 = vmatmul.bf16.vlgmr.msra.gmra.mxu3 %v5436_v31  ;;  %v4246_v15 = vld [vmem:[#allocation8 + $0x404] sm:$0xf]  ;;  %v3609_v20 = vor.u32 %v4214_v53, %v3606_v27  ;;  %v3564_v60 = vld [vmem:[#allocation8 + $0x2a8] sm:$0xf]  ;;  %v4205_v58 = vld [vmem:[#allocation8 + $0x2b4] sm:$0xf0] }
 0x120   : > { %2406 = vmatpush.bf16.msrb.mxu0 %v3577_v17  ;;  %v4282_v17 = vld [vmem:[#allocation8 + $0x524] sm:$0xf]  ;;  %v3737_v12 = vor.u32 %v4246_v15, %v3734_v28  ;;  %v3292_v32 = vld [vmem:[#allocation8 + $0x88] sm:$0xf]  ;;  %v4233_v39 = vld [vmem:[#allocation8 + $0x394] sm:$0xf0] }
 0x121   : > { %2419 = vmatpush.bf16.msrb.mxu1 %v3705_v56  ;;  %2432 = vmatpush.bf16.msrb.mxu2 %v3833_v50  ;;  %v3878_v56 = vld [vmem:[#allocation8 + $0x530] sm:$0xf0]  ;;  %v3497_v50 = vor.u32 %v4186_v59, %v3494_v6  ;;  %v3437_v59 = vor.u32 %v4173_v43, %v3436_v26  ;;  %v3565_v6 = vor.u32 %v4205_v58, %v3564_v60  ;;  %v3420_v52 = vld [vmem:[#allocation8 + $0x188] sm:$0xf]  ;;  %v4133_v27 = vld [vmem:[#allocation8 + $0x74] sm:$0xf0] }
 0x122   : > { %2445 = vmatpush.bf16.msrb.mxu3 %v3961_v9  ;;  %v3753_v9 = vor.u32 %v4250_v35, %v3750_v63  ;;  %v3881_v16 = vor.u32 %v4282_v17, %v3878_v56  ;;  %v4169_v63 = vld [vmem:[#allocation8 + $0x194] sm:$0xf0]  ;;  %v3548_v17 = vld [vmem:[#allocation8 + $0x288] sm:$0xf] }
 0x123   : > { %v4201_v56 = vld [vmem:[#allocation8 + $0x294] sm:$0xf0]  ;;  %v3276_v53 = vld [vmem:[#allocation8 + $0x68] sm:$0xf] }
 0x124   : > { %2407 = vmatpush.bf16.msrb.mxu0 %v3561_v29  ;;  %v4278_v29 = vld [vmem:[#allocation8 + $0x504] sm:$0xf]  ;;  %v3404_v15 = vld [vmem:[#allocation8 + $0x168] sm:$0xf]  ;;  %v4165_v28 = vld [vmem:[#allocation8 + $0x174] sm:$0xf0] }
 0x125   : > { %2420 = vmatpush.bf16.msrb.mxu1 %v3689_v11  ;;  %2433 = vmatpush.bf16.msrb.mxu2 %v3817_v62  ;;  %v3862_v11 = vld [vmem:[#allocation8 + $0x510] sm:$0xf0]  ;;  %v3340_v62 = vld [vmem:[#allocation8 + $0xe8] sm:$0xf]  ;;  %v4129_v47 = vld [vmem:[#allocation8 + $0x54] sm:$0xf0] }
 0x126   : > { %2446 = vmatpush.bf16.msrb.mxu3 %v3945_v24  ;;  %v4181_v24 = vld [vmem:[#allocation8 + $0x1f4] sm:$0xf0]  ;;  %v3260_v34 = vld [vmem:[#allocation8 + $0x48] sm:$0xf] }
 0x127   : > { %v3469_v1 = vor.u32 %v4181_v24, %v3468_v14  ;;  %v3277_v14 = vor.u32 %v4133_v27, %v3276_v53  ;;  %v3244_v18 = vld [vmem:[#allocation8 + $0x28] sm:$0xf]  ;;  %v4157_v23 = vld [vmem:[#allocation8 + $0x134] sm:$0xf0] }
 0x128   : > { %2408 = vmatpush.bf16.msrb.mxu0 %v3545_v2  ;;  %v4245_v2 = vld [vmem:[#allocation8 + $0x3f4] sm:$0xf0]  ;;  %v3372_v54 = vld [vmem:[#allocation8 + $0x128] sm:$0xf] }
 0x129   : > { %2421 = vmatpush.bf16.msrb.mxu1 %v3673_v8  ;;  %2434 = vmatpush.bf16.msrb.mxu2 %v3801_v49  ;;  %v3865_v8 = vor.u32 %v4278_v29, %v3862_v11  ;;  %v3341_v49 = vor.u32 %v4149_v45, %v3340_v62  ;;  %v3725_v4 = vor.u32 %v4245_v2, %v3724_v51  ;;  %v3532_v29 = vld [vmem:[#allocation8 + $0x268] sm:$0xf]  ;;  %v4197_v11 = vld [vmem:[#allocation8 + $0x274] sm:$0xf0] }
 0x12a   : > { %2447 = vmatpush.bf16.msrb.mxu3 %v3929_v42  ;;  %v4145_v42 = vld [vmem:[#allocation8 + $0xd4] sm:$0xf0]  ;;  %v3660_v62 = vld [vmem:[#allocation8 + $0x368] sm:$0xf]  ;;  %v3533_v24 = vor.u32 %v4197_v11, %v3532_v29  ;;  %v3373_v26 = vor.u32 %v4157_v23, %v3372_v54 }
 0x12b   : > { %v4229_v45 = vld [vmem:[#allocation8 + $0x374] sm:$0xf0]  ;;  %v3516_v2 = vld [vmem:[#allocation8 + $0x248] sm:$0xf] }
 0x12c   : > { %2409 = vmatpush.bf16.msrb.mxu0 %v3529_v46  ;;  %v3708_v46 = vld [vmem:[#allocation8 + $0x3c8] sm:$0xf]  ;;  %v4161_v51 = vld [vmem:[#allocation8 + $0x154] sm:$0xf0] }
 0x12d   : > { %2422 = vmatpush.bf16.msrb.mxu1 %v3657_v57  ;;  %2435 = vmatpush.bf16.msrb.mxu2 %v3785_v55  ;;  %v4241_v57 = vld [vmem:[#allocation8 + $0x3d4] sm:$0xf0]  ;;  %v3325_v55 = vor.u32 %v4145_v42, %v3324_v5  ;;  %v3356_v43 = vld [vmem:[#allocation8 + $0x108] sm:$0xf] }
 0x12e   : > { %2448 = vmatpush.bf16.msrb.mxu3 %v3913_v3  ;;  %v4141_v3 = vld [vmem:[#allocation8 + $0xb4] sm:$0xf0]  ;;  %v3709_v44 = vor.u32 %v4241_v57, %v3708_v46  ;;  %v3500_v46 = vld [vmem:[#allocation8 + $0x228] sm:$0xf] }
 0x12f   : > { %v4189_v57 = vld [vmem:[#allocation8 + $0x234] sm:$0xf0]  ;;  %v3484_v58 = vld [vmem:[#allocation8 + $0x208] sm:$0xf] }
 0x130   : > { %2410 = vmatpush.bf16.msrb.mxu0 %v3513_v25  ;;  %v3692_v25 = vld [vmem:[#allocation8 + $0x3a8] sm:$0xf]  ;;  %v4153_v60 = vld [vmem:[#allocation8 + $0x114] sm:$0xf0] }
 0x131   : > { %2423 = vmatpush.bf16.msrb.mxu1 %v3641_v22  ;;  %2436 = vmatpush.bf16.msrb.mxu2 %v3769_v13  ;;  %v4237_v22 = vld [vmem:[#allocation8 + $0x3b4] sm:$0xf0]  ;;  %v3309_v13 = vor.u32 %v4141_v3, %v3308_v36  ;;  %v3228_v36 = vld [vmem:[#allocation8 + $0x8] sm:$0xf] }
 0x132   : > { %2449 = vmatpush.bf16.msrb.mxu3 %v3897_v38  ;;  %v4137_v38 = vld [vmem:[#allocation8 + $0x94] sm:$0xf0]  ;;  %v3693_v35 = vor.u32 %v4237_v22, %v3692_v25  ;;  %v3804_v54 = vld [vmem:[#allocation8 + $0x488] sm:$0xf] }
 0x133   : > { %v3293_v41 = vor.u32 %v4137_v38, %v3292_v32  ;;  %v4121_v3 = vld [vmem:[#allocation8 + $0x14] sm:$0xf0]  ;;  %v3980_v38 = vld [vmem:[#allocation8 + $0x5e8] sm:$0xf] }
 0x134   : > { %2411 = vmatpush.bf16.msrb.mxu0 %v3497_v50  ;;  %v3676_v50 = vld [vmem:[#allocation8 + $0x388] sm:$0xf]  ;;  %v4185_v22 = vld [vmem:[#allocation8 + $0x214] sm:$0xf0] }
 0x135   : > { %2424 = vmatpush.bf16.msrb.mxu1 %v3625_v40  ;;  %2437 = vmatpush.bf16.msrb.mxu2 %v3753_v9  ;;  %v3421_v40 = vor.u32 %v4169_v63, %v3420_v52  ;;  %v3549_v9 = vor.u32 %v4201_v56, %v3548_v17  ;;  %v4277_v32 = vld [vmem:[#allocation8 + $0x4f4] sm:$0xf0]  ;;  %v3229_v52 = vor.u32 %v4121_v3, %v3228_v36  ;;  %v4147_v63 = vld [vmem:[#allocation8 + $0xec] sm:$0xf]  ;;  %v3342_v17 = vld [vmem:[#allocation8 + $0xf8] sm:$0xf0] }
 0x136   : > { %2450 = vmatpush.bf16.msrb.mxu3 %v3881_v16  ;;  %v3677_v16 = vor.u32 %v4233_v39, %v3676_v50  ;;  %v3357_v56 = vor.u32 %v4153_v60, %v3356_v43  ;;  %v3485_v50 = vor.u32 %v4185_v22, %v3484_v58  ;;  %v4179_v39 = vld [vmem:[#allocation8 + $0x1ec] sm:$0xf]  ;;  %v3345_v27 = vor.u32 %v4147_v63, %v3342_v17  ;;  %v4305_v11 = vld [vmem:[#allocation8 + $0x5d4] sm:$0xf0]  ;;  %v3932_v23 = vld [vmem:[#allocation8 + $0x588] sm:$0xf] }
 0x137   : > { %v3422_v36 = vld [vmem:[#allocation8 + $0x198] sm:$0xf0]  ;;  %v3788_v58 = vld [vmem:[#allocation8 + $0x468] sm:$0xf] }
 0x138   : > { %2412 = vmatpush.bf16.msrb.mxu0 %v3481_v19  ;;  %v3405_v19 = vor.u32 %v4165_v28, %v3404_v15  ;;  %v3836_v15 = vld [vmem:[#allocation8 + $0x4c8] sm:$0xf] }
 0x139   : > { %2425 = vmatpush.bf16.msrb.mxu1 %v3609_v20  ;;  %2438 = vmatpush.bf16.msrb.mxu2 %v3737_v12  ;;  %v3388_v20 = vld [vmem:[#allocation8 + $0x148] sm:$0xf]  ;;  %v3661_v12 = vor.u32 %v4229_v45, %v3660_v62  ;;  %v4143_v62 = vld [vmem:[#allocation8 + $0xcc] sm:$0xf]  ;;  %v3326_v45 = vld [vmem:[#allocation8 + $0xd8] sm:$0xf0] }
 0x13a   : > { %2451 = vmatpush.bf16.msrb.mxu3 %v3865_v8  ;;  %v4193_v8 = vld [vmem:[#allocation8 + $0x254] sm:$0xf0]  ;;  %v3389_v5 = vor.u32 %v4161_v51, %v3388_v20  ;;  %v3964_v28 = vld [vmem:[#allocation8 + $0x5c8] sm:$0xf] }
 0x13b   : > { %2413 = vmatmul.bf16.vlgmr.msrb.gmra.mxu0 %v5434_v48  ;;  %v3517_v42 = vor.u32 %v4193_v8, %v3516_v2  ;;  %v3820_v20 = vld [vmem:[#allocation8 + $0x4a8] sm:$0xf]  ;;  %v4301_v8 = vld [vmem:[#allocation8 + $0x5b4] sm:$0xf0] }
 0x13c   : > { %2457 = vmatpush.bf16.msra.mxu0 %v3341_v49  ;;  %2439 = vmatmul.bf16.vlgmr.msrb.gmra.mxu2 %v5444_v21  ;;  %v3644_v49 = vld [vmem:[#allocation8 + $0x348] sm:$0xf] }
 0x13d   : > { %2470 = vmatpush.bf16.msra.mxu1 %v3469_v1  ;;  %2483 = vmatpush.bf16.msra.mxu2 %v3597_v33  ;;  %v4225_v1 = vld [vmem:[#allocation8 + $0x354] sm:$0xf0]  ;;  %v3261_v33 = vor.u32 %v4129_v47, %v3260_v34  ;;  %v3965_v34 = vor.u32 %v4305_v11, %v3964_v28  ;;  %v3329_v47 = vor.u32 %v4143_v62, %v3326_v45  ;;  %v3948_v51 = vld [vmem:[#allocation8 + $0x5a8] sm:$0xf] }
 0x13e   : > { %2496 = vmatpush.bf16.msra.mxu3 %v3725_v4  ;;  %2426 = vmatmul.bf16.vlgmr.msrb.gmra.mxu1 %v5438_v10  ;;  %v4125_v4 = vld [vmem:[#allocation8 + $0x34] sm:$0xf0]  ;;  %v3645_v37 = vor.u32 %v4225_v1, %v3644_v49  ;;  %v4139_v49 = vld [vmem:[#allocation8 + $0xac] sm:$0xf]  ;;  %v3310_v1 = vld [vmem:[#allocation8 + $0xb8] sm:$0xf0] }
 0x13f   : > { %2452 = vmatmul.bf16.vlgmr.msrb.gmra.mxu3 %v5446_v0  ;;  %v3916_v22 = vld [vmem:[#allocation8 + $0x568] sm:$0xf] }
 0x140   : > { %2458 = vmatpush.bf16.msra.mxu0 %v3325_v55  ;;  %v3628_v55 = vld [vmem:[#allocation8 + $0x328] sm:$0xf] }
 0x141   : > { %2471 = vmatpush.bf16.msra.mxu1 %v3453_v30  ;;  %2484 = vmatpush.bf16.msra.mxu2 %v3581_v61  ;;  %v4221_v30 = vld [vmem:[#allocation8 + $0x334] sm:$0xf0]  ;;  %v3245_v61 = vor.u32 %v4125_v4, %v3244_v18  ;;  %v3949_v18 = vor.u32 %v4301_v8, %v3948_v51  ;;  %v3313_v4 = vor.u32 %v4139_v49, %v3310_v1  ;;  %v3246_v51 = vld [vmem:[#allocation8 + $0x38] sm:$0xf0]  ;;  %v3740_v1 = vld [vmem:[#allocation8 + $0x408] sm:$0xf] }
 0x142   : > { %2497 = vmatpush.bf16.msra.mxu3 %v3709_v44  ;;  %v3501_v44 = vor.u32 %v4189_v57, %v3500_v46  ;;  %v3629_v25 = vor.u32 %v4221_v30, %v3628_v55  ;;  %v4297_v57 = vld [vmem:[#allocation8 + $0x594] sm:$0xf0]  ;;  %v4135_v55 = vld [vmem:[#allocation8 + $0x8c] sm:$0xf]  ;;  %v3294_v30 = vld [vmem:[#allocation8 + $0x98] sm:$0xf0] }
 0x143   : > { %v3933_v43 = vor.u32 %v4297_v57, %v3932_v23  ;;  %v3297_v60 = vor.u32 %v4135_v55, %v3294_v30  ;;  %v3374_v8 = vld [vmem:[#allocation8 + $0x138] sm:$0xf0]  ;;  %v4211_v30 = vld [vmem:[#allocation8 + $0x2ec] sm:$0xf] }
 0x144   : > { %2459 = vmatpush.bf16.msra.mxu0 %v3309_v13  ;;  %v3612_v13 = vld [vmem:[#allocation8 + $0x308] sm:$0xf]  ;;  %v3230_v23 = vld [vmem:[#allocation8 + $0x18] sm:$0xf0] }
 0x145   : > { %2472 = vmatpush.bf16.msra.mxu1 %v3437_v59  ;;  %2485 = vmatpush.bf16.msra.mxu2 %v3565_v6  ;;  %v4217_v59 = vld [vmem:[#allocation8 + $0x314] sm:$0xf0]  ;;  %v3852_v6 = vld [vmem:[#allocation8 + $0x4e8] sm:$0xf]  ;;  %v3358_v57 = vld [vmem:[#allocation8 + $0x118] sm:$0xf0] }
 0x146   : > { %2498 = vmatpush.bf16.msra.mxu3 %v3693_v35  ;;  %v4309_v35 = vld [vmem:[#allocation8 + $0x5f4] sm:$0xf0] }
 0x147   : > { %v3981_v53 = vor.u32 %v4309_v35, %v3980_v38  ;;  %v4163_v38 = vld [vmem:[#allocation8 + $0x16c] sm:$0xf] }
 0x148   : > { %2460 = vmatpush.bf16.msra.mxu0 %v3293_v41  ;;  %v3470_v41 = vld [vmem:[#allocation8 + $0x1f8] sm:$0xf0] }
 0x149   : > { %2473 = vmatpush.bf16.msra.mxu1 %v3421_v40  ;;  %2486 = vmatpush.bf16.msra.mxu2 %v3549_v9  ;;  %v3613_v40 = vor.u32 %v4217_v59, %v3612_v13  ;;  %v3853_v9 = vor.u32 %v4277_v32, %v3852_v6  ;;  %v3473_v29 = vor.u32 %v4179_v39, %v3470_v41  ;;  %v4293_v59 = vld [vmem:[#allocation8 + $0x574] sm:$0xf0]  ;;  %v4131_v6 = vld [vmem:[#allocation8 + $0x6c] sm:$0xf]  ;;  %v3278_v32 = vld [vmem:[#allocation8 + $0x78] sm:$0xf0] }
 0x14a   : > { %2499 = vmatpush.bf16.msra.mxu3 %v3677_v16  ;;  %v4273_v16 = vld [vmem:[#allocation8 + $0x4d4] sm:$0xf0]  ;;  %v3917_v63 = vor.u32 %v4293_v59, %v3916_v22  ;;  %v3281_v17 = vor.u32 %v4131_v6, %v3278_v32  ;;  %v3900_v39 = vld [vmem:[#allocation8 + $0x548] sm:$0xf]  ;;  %v4307_v59 = vld [vmem:[#allocation8 + $0x5ec] sm:$0xf] }
 0x14b   : > { %v3982_v6 = vld [vmem:[#allocation8 + $0x5f8] sm:$0xf0] }
 0x14c   : > { %2461 = vmatpush.bf16.msra.mxu0 %v3277_v14  ;;  %v4175_v14 = vld [vmem:[#allocation8 + $0x1cc] sm:$0xf] }
 0x14d   : > { %2474 = vmatpush.bf16.msra.mxu1 %v3405_v19  ;;  %2487 = vmatpush.bf16.msra.mxu2 %v3533_v24  ;;  %v3454_v19 = vld [vmem:[#allocation8 + $0x1d8] sm:$0xf0]  ;;  %v3837_v24 = vor.u32 %v4273_v16, %v3836_v15  ;;  %v4159_v15 = vld [vmem:[#allocation8 + $0x14c] sm:$0xf] }
 0x14e   : > { %2500 = vmatpush.bf16.msra.mxu3 %v3661_v12  ;;  %v4269_v12 = vld [vmem:[#allocation8 + $0x4b4] sm:$0xf0]  ;;  %v3457_v2 = vor.u32 %v4175_v14, %v3454_v19  ;;  %v3390_v16 = vld [vmem:[#allocation8 + $0x158] sm:$0xf0]  ;;  %v3756_v19 = vld [vmem:[#allocation8 + $0x428] sm:$0xf] }
 0x150   : > { %2462 = vmatpush.bf16.msra.mxu0 %v3261_v33  ;;  %v4171_v33 = vld [vmem:[#allocation8 + $0x1ac] sm:$0xf] }
 0x151   : > { %2475 = vmatpush.bf16.msra.mxu1 %v3389_v5  ;;  %2488 = vmatpush.bf16.msra.mxu2 %v3517_v42  ;;  %v3438_v5 = vld [vmem:[#allocation8 + $0x1b8] sm:$0xf0]  ;;  %v3821_v42 = vor.u32 %v4269_v12, %v3820_v20  ;;  %v4285_v20 = vld [vmem:[#allocation8 + $0x534] sm:$0xf0]  ;;  %v4123_v12 = vld [vmem:[#allocation8 + $0x2c] sm:$0xf] }
 0x152   : > { %2501 = vmatpush.bf16.msra.mxu3 %v3645_v37  ;;  %v4265_v37 = vld [vmem:[#allocation8 + $0x494] sm:$0xf0]  ;;  %v3441_v46 = vor.u32 %v4171_v33, %v3438_v5 }
 0x153   : > { %v4249_v33 = vld [vmem:[#allocation8 + $0x414] sm:$0xf0] }
 0x154   : > { %2463 = vmatpush.bf16.msra.mxu0 %v3245_v61  ;;  %v4167_v61 = vld [vmem:[#allocation8 + $0x18c] sm:$0xf] }
 0x155   : > { %2476 = vmatpush.bf16.msra.mxu1 %v3373_v26  ;;  %2489 = vmatpush.bf16.msra.mxu2 %v3501_v44  ;;  %v3805_v26 = vor.u32 %v4265_v37, %v3804_v54  ;;  %v3425_v13 = vor.u32 %v4167_v61, %v3422_v36  ;;  %v4119_v54 = vld [vmem:[#allocation8 + $0xc] sm:$0xf]  ;;  %v3598_v61 = vld [vmem:[#allocation8 + $0x2f8] sm:$0xf0] }
 0x156   : > { %2502 = vmatpush.bf16.msra.mxu3 %v3629_v25  ;;  %v4261_v25 = vld [vmem:[#allocation8 + $0x474] sm:$0xf0]  ;;  %v4243_v36 = vld [vmem:[#allocation8 + $0x3ec] sm:$0xf] }
 0x157   : > { %v3789_v35 = vor.u32 %v4261_v25, %v3788_v58  ;;  %v4275_v58 = vld [vmem:[#allocation8 + $0x4ec] sm:$0xf]  ;;  %v3854_v25 = vld [vmem:[#allocation8 + $0x4f8] sm:$0xf0] }
 0x158   : > { %2464 = vmatpush.bf16.msra.mxu0 %v3229_v52  ;;  %v5460_v3 = vpop.f32.mrf.mxu0  ;;  %v3406_v52 = vld [vmem:[#allocation8 + $0x178] sm:$0xf0] }
 0x159   : > { %2477 = vmatpush.bf16.msra.mxu1 %v3357_v56  ;;  %2490 = vmatpush.bf16.msra.mxu2 %v3485_v50  ;;  %v3772_v56 = vld [vmem:[#allocation8 + $0x448] sm:$0xf]  ;;  %v4257_v50 = vld [vmem:[#allocation8 + $0x454] sm:$0xf0]  ;;  %v3409_v41 = vor.u32 %v4163_v38, %v3406_v52  ;;  %v3601_v38 = vor.u32 %v4211_v30, %v3598_v61  ;;  %v4227_v30 = vld [vmem:[#allocation8 + $0x36c] sm:$0xf] }
 0x15a   : > { %2503 = vmatpush.bf16.msra.mxu3 %v3613_v40  ;;  %v4289_v40 = vld [vmem:[#allocation8 + $0x554] sm:$0xf0]  ;;  %v3773_v11 = vor.u32 %v4257_v50, %v3772_v56  ;;  %v4239_v56 = vld [vmem:[#allocation8 + $0x3cc] sm:$0xf]  ;;  %v3985_v50 = vor.u32 %v4307_v59, %v3982_v6  ;;  %v3518_v6 = vld [vmem:[#allocation8 + $0x258] sm:$0xf0] }
 0x15b   : > { %2465 = vmatmul.bf16.vlgmr.msra.gmra.mxu0 %v5432_v7  ;;  %v5462_v44 = vpop.f32.mrf.mxu1  ;;  %v3901_v45 = vor.u32 %v4289_v40, %v3900_v39  ;;  %v3710_v39 = vld [vmem:[#allocation8 + $0x3d8] sm:$0xf0]  ;;  %v4191_v59 = vld [vmem:[#allocation8 + $0x24c] sm:$0xf] }
 0x15c   : > { %2509 = vmatpush.bf16.msrb.mxu0 %v3853_v9  ;;  %2491 = vmatmul.bf16.vlgmr.msra.gmra.mxu2 %v5434_v48  ;;  %v4127_v9 = vld [vmem:[#allocation8 + $0x4c] sm:$0xf]  ;;  %v3838_v40 = vld [vmem:[#allocation8 + $0x4d8] sm:$0xf0] }
 0x15d   : > { %2522 = vmatpush.bf16.msrb.mxu1 %v3981_v53  ;;  %2535 = vmatpush.bf16.msrb.mxu2 %v3345_v27  ;;  %v3262_v53 = vld [vmem:[#allocation8 + $0x58] sm:$0xf0] }
 0x15e   : > { %2548 = vmatpush.bf16.msrb.mxu3 %v3473_v29  ;;  %2478 = vmatmul.bf16.vlgmr.msra.gmra.mxu1 %v5436_v31  ;;  %v3265_v14 = vor.u32 %v4127_v9, %v3262_v53  ;;  %v4303_v9 = vld [vmem:[#allocation8 + $0x5cc] sm:$0xf]  ;;  %v3966_v53 = vld [vmem:[#allocation8 + $0x5d8] sm:$0xf0] }
 0x15f   : > { %2504 = vmatmul.bf16.vlgmr.msra.gmra.mxu3 %v5438_v10  ;;  %v5464_v27 = vpop.f32.mrf.mxu2 }
 0x160   : > { %2510 = vmatpush.bf16.msrb.mxu0 %v3837_v24  ;;  %v1300_v28 = vpop.f32.mrf.mxu0  ;;  %v4253_v24 = vld [vmem:[#allocation8 + $0x434] sm:$0xf0] }
 0x161   : > { %2523 = vmatpush.bf16.msrb.mxu1 %v3965_v34  ;;  %2536 = vmatpush.bf16.msrb.mxu2 %v3329_v47  ;;  %v3884_v34 = vld [vmem:[#allocation8 + $0x528] sm:$0xf]  ;;  %v3393_v47 = vor.u32 %v4159_v15, %v3390_v16  ;;  %v3757_v49 = vor.u32 %v4253_v24, %v3756_v19  ;;  %v3713_v16 = vor.u32 %v4239_v56, %v3710_v39  ;;  %v3694_v19 = vld [vmem:[#allocation8 + $0x3b8] sm:$0xf0]  ;;  %v4267_v24 = vld [vmem:[#allocation8 + $0x4ac] sm:$0xf] }
 0x162   : > { %2549 = vmatpush.bf16.msrb.mxu3 %v3457_v2  ;;  %v5466_v29 = vpop.f32.mrf.mxu3  ;;  %v4155_v2 = vld [vmem:[#allocation8 + $0x12c] sm:$0xf]  ;;  %v3885_v5 = vor.u32 %v4285_v20, %v3884_v34  ;;  %v3822_v34 = vld [vmem:[#allocation8 + $0x4b8] sm:$0xf0] }
 0x163   : > { %v1313_v62 = vpop.f32.mrf.mxu1  ;;  %v3377_v37 = vor.u32 %v4155_v2, %v3374_v8  ;;  %v3950_v20 = vld [vmem:[#allocation8 + $0x5b8] sm:$0xf0]  ;;  %v3825_v2 = vor.u32 %v4267_v24, %v3822_v34  ;;  %v4199_v8 = vld [vmem:[#allocation8 + $0x28c] sm:$0xf] }
 0x164   : > { %2511 = vmatpush.bf16.msrb.mxu0 %v3821_v42  ;;  %v3249_v42 = vor.u32 %v4123_v12, %v3246_v51  ;;  %v3566_v62 = vld [vmem:[#allocation8 + $0x2b8] sm:$0xf0]  ;;  %v4283_v24 = vld [vmem:[#allocation8 + $0x52c] sm:$0xf] }
 0x165   : > { %2524 = vmatpush.bf16.msrb.mxu1 %v3949_v18  ;;  %2537 = vmatpush.bf16.msrb.mxu2 %v3313_v4  ;;  %v3868_v18 = vld [vmem:[#allocation8 + $0x508] sm:$0xf]  ;;  %v4281_v4 = vld [vmem:[#allocation8 + $0x514] sm:$0xf0]  ;;  %v3902_v39 = vld [vmem:[#allocation8 + $0x558] sm:$0xf0] }
 0x166   : > { %2550 = vmatpush.bf16.msrb.mxu3 %v3441_v46  ;;  %v4151_v46 = vld [vmem:[#allocation8 + $0x10c] sm:$0xf]  ;;  %v3869_v22 = vor.u32 %v4281_v4, %v3868_v18  ;;  %v3886_v34 = vld [vmem:[#allocation8 + $0x538] sm:$0xf0] }
 0x167   : > { %v1326_v55 = vpop.f32.mrf.mxu2  ;;  %v3361_v32 = vor.u32 %v4151_v46, %v3358_v57  ;;  %v4295_v4 = vld [vmem:[#allocation8 + $0x58c] sm:$0xf] }
 0x168   : > { %2512 = vmatpush.bf16.msrb.mxu0 %v3805_v26  ;;  %v4195_v57 = vld [vmem:[#allocation8 + $0x26c] sm:$0xf]  ;;  %v3534_v55 = vld [vmem:[#allocation8 + $0x278] sm:$0xf0] }
 0x169   : > { %2525 = vmatpush.bf16.msrb.mxu1 %v3933_v43  ;;  %2538 = vmatpush.bf16.msrb.mxu2 %v3297_v60  ;;  %v3741_v43 = vor.u32 %v4249_v33, %v3740_v1  ;;  %v3726_v60 = vld [vmem:[#allocation8 + $0x3f8] sm:$0xf0]  ;;  %v4231_v1 = vld [vmem:[#allocation8 + $0x38c] sm:$0xf] }
 0x16a   : > { %2551 = vmatpush.bf16.msrb.mxu3 %v3425_v13  ;;  %v1339_v26 = vpop.f32.mrf.mxu3  ;;  %v3233_v13 = vor.u32 %v4119_v54, %v3230_v23  ;;  %v3729_v52 = vor.u32 %v4243_v36, %v3726_v60  ;;  %v3934_v54 = vld [vmem:[#allocation8 + $0x598] sm:$0xf0]  ;;  %v4291_v60 = vld [vmem:[#allocation8 + $0x56c] sm:$0xf] }
 0x16b   : > { %v3937_v61 = vor.u32 %v4295_v4, %v3934_v54  ;;  %v3662_v36 = vld [vmem:[#allocation8 + $0x378] sm:$0xf0]  ;;  %v4259_v26 = vld [vmem:[#allocation8 + $0x46c] sm:$0xf] }
 0x16c   : > { %2513 = vmatpush.bf16.msrb.mxu0 %v3789_v35  ;;  %v3857_v35 = vor.u32 %v4275_v58, %v3854_v25  ;;  %v3918_v58 = vld [vmem:[#allocation8 + $0x578] sm:$0xf0]  ;;  %v3537_v25 = vor.u32 %v4195_v57, %v3534_v55 }
 0x16d   : > { %2526 = vmatpush.bf16.msrb.mxu1 %v3917_v63  ;;  %2539 = vmatpush.bf16.msrb.mxu2 %v3281_v17  ;;  %v4207_v63 = vld [vmem:[#allocation8 + $0x2cc] sm:$0xf]  ;;  %v3582_v17 = vld [vmem:[#allocation8 + $0x2d8] sm:$0xf0] }
 0x16e   : > { %2552 = vmatpush.bf16.msrb.mxu3 %v3409_v41  ;;  %v4271_v41 = vld [vmem:[#allocation8 + $0x4cc] sm:$0xf]  ;;  %v3585_v15 = vor.u32 %v4207_v63, %v3582_v17  ;;  %v3774_v17 = vld [vmem:[#allocation8 + $0x458] sm:$0xf0] }
 0x16f   : > { %v3841_v28 = vor.u32 %v4271_v41, %v3838_v40  ;;  %v4255_v63 = vld [vmem:[#allocation8 + $0x44c] sm:$0xf]  ;;  %v3521_v40 = vor.u32 %v4191_v59, %v3518_v6  ;;  %v3870_v4 = vld [vmem:[#allocation8 + $0x518] sm:$0xf0]  ;;  %v5489_v59 = vld [vmem:[#allocation11] sm:$0xf] }
 0x170   : > { %2514 = vmatpush.bf16.msrb.mxu0 %v3773_v11  ;;  %v4203_v11 = vld [vmem:[#allocation8 + $0x2ac] sm:$0xf]  ;;  %v4349_v55 = vld [vmem:[#allocation12 + $0x38] sm:$0xff] }
 0x171   : > { %2527 = vmatpush.bf16.msrb.mxu1 %v3901_v45  ;;  %2540 = vmatpush.bf16.msrb.mxu2 %v3265_v14  ;;  %v4235_v45 = vld [vmem:[#allocation8 + $0x3ac] sm:$0xf]  ;;  %v3969_v14 = vor.u32 %v4303_v9, %v3966_v53  ;;  %v3569_v12 = vor.u32 %v4203_v11, %v3566_v62 }
 0x172   : > { %2553 = vmatpush.bf16.msrb.mxu3 %v3393_v47  ;;  %v4299_v47 = vld [vmem:[#allocation8 + $0x5ac] sm:$0xf]  ;;  %v3697_v51 = vor.u32 %v4235_v45, %v3694_v19  ;;  %v3630_v45 = vld [vmem:[#allocation8 + $0x338] sm:$0xf0] }
 0x173   : > { %v3953_v33 = vor.u32 %v4299_v47, %v3950_v20  ;;  %v4219_v11 = vld [vmem:[#allocation8 + $0x32c] sm:$0xf]  ;;  %v3758_v19 = vld [vmem:[#allocation8 + $0x438] sm:$0xf0] }
 0x174   : > { %2515 = vmatpush.bf16.msrb.mxu0 %v3757_v49  ;;  %v3550_v49 = vld [vmem:[#allocation8 + $0x298] sm:$0xf0]  ;;  %v3633_v20 = vor.u32 %v4219_v11, %v3630_v45 }
 0x175   : > { %2528 = vmatpush.bf16.msrb.mxu1 %v3885_v5  ;;  %2541 = vmatpush.bf16.msrb.mxu2 %v3249_v42  ;;  %v3678_v5 = vld [vmem:[#allocation8 + $0x398] sm:$0xf0]  ;;  %v4263_v42 = vld [vmem:[#allocation8 + $0x48c] sm:$0xf] }
 0x176   : > { %2554 = vmatpush.bf16.msrb.mxu3 %v3377_v37  ;;  %v3681_v23 = vor.u32 %v4231_v1, %v3678_v5  ;;  %v3614_v1 = vld [vmem:[#allocation8 + $0x318] sm:$0xf0] }
 0x177   : > { %v3742_v5 = vld [vmem:[#allocation8 + $0x418] sm:$0xf0] }
 0x178   : > { %2516 = vmatpush.bf16.msrb.mxu0 %v3741_v43  ;;  %v5472_v18 = vpop.f32.mrf.mxu0  ;;  %v3790_v43 = vld [vmem:[#allocation8 + $0x478] sm:$0xf0] }
 0x179   : > { %2529 = vmatpush.bf16.msrb.mxu1 %v3869_v22  ;;  %2542 = vmatpush.bf16.msrb.mxu2 %v3233_v13  ;;  %v3665_v22 = vor.u32 %v4227_v30, %v3662_v36  ;;  %v3793_v13 = vor.u32 %v4259_v26, %v3790_v43  ;;  %v4357_v30 = vld [vmem:[#allocation12 + $0x78] sm:$0xff]  ;;  %v2311_v36 = vadd.f32 %v5472_v18, %v5460_v3  ;;  %v4356_v26 = vld [vmem:[#allocation12 + $0x70] sm:$0xff]  ;;  %v4347_v43 = vld [vmem:[#allocation12 + $0x28] sm:$0xff] }
 0x17a   : > { %2555 = vmatpush.bf16.msrb.mxu3 %v3361_v32  ;;  %v4223_v32 = vld [vmem:[#allocation8 + $0x34c] sm:$0xf]  ;;  %v4346_v3 = vld [vmem:[#allocation12 + $0x20] sm:$0xff] }
 0x17b   : > { %2517 = vmatmul.bf16.vlgmr.msrb.gmra.mxu0 %v5444_v21  ;;  %v5474_v37 = vpop.f32.mrf.mxu1  ;;  %v4354_v18 = vld [vmem:[#allocation12 + $0x60] sm:$0xff] }
 0x17c   : > { %2561 = vmatpush.bf16.msra.mxu0 %v3601_v38  ;;  %2543 = vmatmul.bf16.vlgmr.msrb.gmra.mxu2 %v5432_v7  ;;  %v3806_v7 = vld [vmem:[#allocation8 + $0x498] sm:$0xf0]  ;;  %v3921_v38 = vor.u32 %v4291_v60, %v3918_v58  ;;  %v2324_v60 = vadd.f32 %v5474_v37, %v2311_v36  ;;  %v4355_v58 = vld [vmem:[#allocation12 + $0x68] sm:$0xff] }
 0x17d   : > { %2574 = vmatpush.bf16.msra.mxu1 %v3729_v52  ;;  %2587 = vmatpush.bf16.msra.mxu2 %v3857_v35  ;;  %v3809_v46 = vor.u32 %v4263_v42, %v3806_v7  ;;  %v3646_v35 = vld [vmem:[#allocation8 + $0x358] sm:$0xf0]  ;;  %v4279_v7 = vld [vmem:[#allocation8 + $0x50c] sm:$0xf] }
 0x17e   : > { %2600 = vmatpush.bf16.msra.mxu3 %v3985_v50  ;;  %2530 = vmatmul.bf16.vlgmr.msrb.gmra.mxu1 %v5446_v0  ;;  %v4287_v50 = vld [vmem:[#allocation8 + $0x54c] sm:$0xf]  ;;  %v3649_v53 = vor.u32 %v4223_v32, %v3646_v35  ;;  %v3873_v57 = vor.u32 %v4279_v7, %v3870_v4  ;;  %v4362_v4 = vld [vmem:[#allocation12 + $0xa0] sm:$0xff] }
 0x17f   : > { %2556 = vmatmul.bf16.vlgmr.msrb.gmra.mxu3 %v5436_v31  ;;  %v3553_v31 = vor.u32 %v4199_v8, %v3550_v49  ;;  %v5476_v52 = vpop.f32.mrf.mxu2  ;;  %v3905_v62 = vor.u32 %v4287_v50, %v3902_v39  ;;  %v4215_v8 = vld [vmem:[#allocation8 + $0x30c] sm:$0xf]  ;;  %v3889_v49 = vor.u32 %v4283_v24, %v3886_v34 }
 0x180   : > { %2562 = vmatpush.bf16.msra.mxu0 %v3585_v15  ;;  %v2312_v41 = vpop.f32.mrf.mxu0  ;;  %v3777_v15 = vor.u32 %v4255_v63, %v3774_v17  ;;  %v2615_v63 = vperm.slane %v5489_v59, 0  ;;  %v4352_v17 = vld [vmem:[#allocation12 + $0x50] sm:$0xff]  ;;  %v4351_v39 = vld [vmem:[#allocation12 + $0x48] sm:$0xff] }
 0x181   : > { %2575 = vmatpush.bf16.msra.mxu1 %v3713_v16  ;;  %2588 = vmatpush.bf16.msra.mxu2 %v3841_v28  ;;  %v4187_v16 = vld [vmem:[#allocation8 + $0x22c] sm:$0xf]  ;;  %v3502_v28 = vld [vmem:[#allocation8 + $0x238] sm:$0xf0] }
 0x182   : > { %2601 = vmatpush.bf16.msra.mxu3 %v3969_v14  ;;  %v5478_v56 = vpop.f32.mrf.mxu3  ;;  %v4251_v14 = vld [vmem:[#allocation8 + $0x42c] sm:$0xf]  ;;  %v3505_v47 = vor.u32 %v4187_v16, %v3502_v28 }
 0x183   : > { %v2325_v9 = vpop.f32.mrf.mxu1 }
 0x184   : > { %2563 = vmatpush.bf16.msra.mxu0 %v3569_v12  ;;  %v3761_v12 = vor.u32 %v4251_v14, %v3758_v19  ;;  %v4342_v9 = vld [vmem:[#allocation12] sm:$0xff] }
 0x185   : > { %2576 = vmatpush.bf16.msra.mxu1 %v3697_v51  ;;  %2589 = vmatpush.bf16.msra.mxu2 %v3825_v2  ;;  %v4183_v51 = vld [vmem:[#allocation8 + $0x20c] sm:$0xf]  ;;  %v3486_v2 = vld [vmem:[#allocation8 + $0x218] sm:$0xf0] }
 0x186   : > { %2602 = vmatpush.bf16.msra.mxu3 %v3953_v33  ;;  %v4247_v33 = vld [vmem:[#allocation8 + $0x40c] sm:$0xf] }
 0x187   : > { %v2338_v42 = vpop.f32.mrf.mxu2 }
 0x188   : > { %2564 = vmatpush.bf16.msra.mxu0 %v3553_v31  ;;  %v3489_v31 = vor.u32 %v4183_v51, %v3486_v2  ;;  %v4365_v51 = vld [vmem:[#allocation12 + $0xb8] sm:$0xff] }
 0x189   : > { %2577 = vmatpush.bf16.msra.mxu1 %v3681_v23  ;;  %2590 = vmatpush.bf16.msra.mxu2 %v3809_v46  ;;  %v3617_v23 = vor.u32 %v4215_v8, %v3614_v1  ;;  %v3745_v46 = vor.u32 %v4247_v33, %v3742_v5 }
 0x18a   : > { %2603 = vmatpush.bf16.msra.mxu3 %v3937_v61  ;;  %v2351_v54 = vpop.f32.mrf.mxu3  ;;  %v4348_v61 = vld [vmem:[#allocation12 + $0x30] sm:$0xff] }
 0x18b   : > { %v4361_v54 = vld [vmem:[#allocation12 + $0x98] sm:$0xff] }
 0x18c   : > { %2565 = vmatpush.bf16.msra.mxu0 %v3537_v25  ;;  %v2337_v25 = vadd.f32 %v5476_v52, %v2324_v60  ;;  %v4372_v60 = vld [vmem:[#allocation12 + $0xf0] sm:$0xff] }
 0x18d   : > { %2578 = vmatpush.bf16.msra.mxu1 %v3665_v22  ;;  %2591 = vmatpush.bf16.msra.mxu2 %v3793_v13 }
 0x18e   : > { %2604 = vmatpush.bf16.msra.mxu3 %v3921_v38  ;;  %v4344_v38 = vld [vmem:[#allocation12 + $0x10] sm:$0xff] }
 0x190   : > { %2566 = vmatpush.bf16.msra.mxu0 %v3521_v40 }
 0x191   : > { %2579 = vmatpush.bf16.msra.mxu1 %v3649_v53  ;;  %2592 = vmatpush.bf16.msra.mxu2 %v3777_v15  ;;  %v4350_v15 = vld [vmem:[#allocation12 + $0x40] sm:$0xff] }
 0x192   : > { %2605 = vmatpush.bf16.msra.mxu3 %v3905_v62 }
 0x194   : > { %2567 = vmatpush.bf16.msra.mxu0 %v3505_v47 }
 0x195   : > { %2580 = vmatpush.bf16.msra.mxu1 %v3633_v20  ;;  %2593 = vmatpush.bf16.msra.mxu2 %v3761_v12  ;;  %v2616_v20 = vperm.slane %v5489_v59, 1 }
 0x196   : > { %2606 = vmatpush.bf16.msra.mxu3 %v3889_v49  ;;  %v4364_v49 = vld [vmem:[#allocation12 + $0xb0] sm:$0xff] }
 0x198   : > { %2568 = vmatpush.bf16.msra.mxu0 %v3489_v31  ;;  %v2362_v22 = vpop.f32.mrf.mxu0  ;;  %v4360_v31 = vld [vmem:[#allocation12 + $0x90] sm:$0xff] }
 0x199   : > { %2581 = vmatpush.bf16.msra.mxu1 %v3617_v23  ;;  %2594 = vmatpush.bf16.msra.mxu2 %v3745_v46 }
 0x19a   : > { %2607 = vmatpush.bf16.msra.mxu3 %v3873_v57  ;;  %v4359_v57 = vld [vmem:[#allocation12 + $0x88] sm:$0xff] }
 0x19b   : > { %2569 = vmatmul.bf16.vlgmr.msra.gmra.mxu0 %v5434_v48  ;;  %v2375_v48 = vpop.f32.mrf.mxu1 }
 0x19c   : > { %2895 = vmatpush.bf16.msrb.mxu0 %v4349_v55  ;;  %2582 = vmatmul.bf16.vlgmr.msra.gmra.mxu1 %v5438_v10  ;;  %v2350_v10 = vadd.f32 %v5478_v56, %v2337_v25  ;;  %v4343_v56 = vld [vmem:[#allocation12 + $0x8] sm:$0xff]  ;;  %v4358_v55 = vld [vmem:[#allocation12 + $0x80] sm:$0xff] }
 0x19d   : > { %2908 = vmatpush.bf16.msrb.mxu1 %v4357_v30  ;;  %2595 = vmatmul.bf16.vlgmr.msra.gmra.mxu2 %v5444_v21  ;;  %v4345_v21 = vld [vmem:[#allocation12 + $0x18] sm:$0xff]  ;;  %v4371_v25 = vld [vmem:[#allocation12 + $0xe8] sm:$0xff] }
 0x19e   : > { %2608 = vmatmul.bf16.vlgmr.msra.gmra.mxu3 %v5446_v0  ;;  %v2363_v13 = vadd.f32 %v2362_v22, %v2350_v10  ;;  %v4353_v0 = vld [vmem:[#allocation12 + $0x58] sm:$0xff]  ;;  %2921 = vmatpush.bf16.msrb.mxu2 %v4365_v51 }
 0x19f   : > { %v2388_v37 = vpop.f32.mrf.mxu2 }
 0x1a0   : > { %2896 = vmatpush.bf16.msrb.mxu0 %v4348_v61  ;;  %v2364_v32 = vpop.f32.mrf.mxu0  ;;  %v2376_v35 = vadd.f32 %v2375_v48, %v2363_v13  ;;  %v2389_v28 = vadd.f32 %v2388_v37, %v5462_v44  ;;  %v4363_v44 = vld [vmem:[#allocation12 + $0xa8] sm:$0xff]  ;;  %v4370_v48 = vld [vmem:[#allocation12 + $0xe0] sm:$0xff]  ;;  %v4369_v13 = vld [vmem:[#allocation12 + $0xd8] sm:$0xff] }
 0x1a1   : > { %2909 = vmatpush.bf16.msrb.mxu1 %v4356_v26  ;;  %v2617_v32 = vperm.slane %v5489_v59, 2 }
 0x1a2   : > { %v2401_v6 = vpop.f32.mrf.mxu3  ;;  %v2623_v50 = vadd.f32 %v2615_v63, %v2376_v35  ;;  %2922 = vmatpush.bf16.msrb.mxu2 %v4364_v49 }
 0x1a3   : > { %v2377_v52 = vpop.f32.mrf.mxu1  ;;  %v2402_v11 = vadd.f32 %v2401_v6, %v2389_v28 }
 0x1a4   : > { %2897 = vmatpush.bf16.msrb.mxu0 %v4347_v43  ;;  %v2627_v53 = vmax.f32 %v2623_v50, 0.0  ;;  %v4373_v43 = vld [vmem:[#allocation12 + $0xf8] sm:$0xff]  ;;  %v4368_v52 = vld [vmem:[#allocation12 + $0xd0] sm:$0xff] }
 0x1a5   : > { %2910 = vmatpush.bf16.msrb.mxu1 %v4355_v58  ;;  %2934 = vmatpush.bf16.msrb.mxu3 %v4373_v43 }
 0x1a6   : > { %v2631_v16 = vpack.c.bf16 %v2627_v53, %v2627_v53  ;;  %2923 = vmatpush.bf16.msrb.mxu2 %v4363_v44  ;;  %v4498_v44 = vld [vmem:[%s5530_s6] ss:$0 sm:$0xff] }
 0x1a7   : > { %v2390_v41 = vpop.f32.mrf.mxu2 }
 0x1a8   : > { %2898 = vmatpush.bf16.msrb.mxu0 %v4346_v3 }
 0x1a9   : > { %2911 = vmatpush.bf16.msrb.mxu1 %v4354_v18  ;;  %2935 = vmatpush.bf16.msrb.mxu3 %v4372_v60 }
 0x1aa   : > { %v2403_v40 = vpop.f32.mrf.mxu3  ;;  %2924 = vmatpush.bf16.msrb.mxu2 %v4362_v4 }
 0x1ab   : > { %v4366_v40 = vld [vmem:[#allocation12 + $0xc0] sm:$0xff] }
 0x1ac   : > { %2899 = vmatpush.bf16.msrb.mxu0 %v4345_v21 }
 0x1ad   : > { %2912 = vmatpush.bf16.msrb.mxu1 %v4353_v0  ;;  %2936 = vmatpush.bf16.msrb.mxu3 %v4371_v25 }
 0x1ae   : > { %2925 = vmatpush.bf16.msrb.mxu2 %v4361_v54 }
 0x1b0   : > { %2900 = vmatpush.bf16.msrb.mxu0 %v4344_v38 }
 0x1b1   : > { %2913 = vmatpush.bf16.msrb.mxu1 %v4352_v17  ;;  %2937 = vmatpush.bf16.msrb.mxu3 %v4370_v48 }
 0x1b2   : > { %2926 = vmatpush.bf16.msrb.mxu2 %v4360_v31 }
 0x1b4   : > { %2901 = vmatpush.bf16.msrb.mxu0 %v4343_v56 }
 0x1b5   : > { %2914 = vmatpush.bf16.msrb.mxu1 %v4351_v39  ;;  %2938 = vmatpush.bf16.msrb.mxu3 %v4369_v13 }
 0x1b6   : > { %2927 = vmatpush.bf16.msrb.mxu2 %v4359_v57 }
 0x1b8   : > { %2902 = vmatpush.bf16.msrb.mxu0 %v4342_v9  ;;  %v2414_v62 = vpop.f32.mrf.mxu0 }
 0x1b9   : > { %2915 = vmatpush.bf16.msrb.mxu1 %v4350_v15  ;;  %v2415_v14 = vadd.f32 %v2414_v62, %v2402_v11  ;;  %2939 = vmatpush.bf16.msrb.mxu3 %v4368_v52 }
 0x1ba   : > { %2928 = vmatpush.bf16.msrb.mxu2 %v4358_v55 }
 0x1bb   : > { %2903 = vmatmul.bf16.vlgmr.msrb.gmra.mxu0 %v2631_v16  ;;  %v2427_v45 = vpop.f32.mrf.mxu1 }
 0x1bc   : > { %v2428_v19 = vadd.f32 %v2427_v45, %v2415_v14 }
 0x1bf   : > { %v2440_v24 = vpop.f32.mrf.mxu2 }
 0x1c0   : > { %v2441_v34 = vadd.f32 %v2440_v24, %v2428_v19  ;;  %v2416_v12 = vpop.f32.mrf.mxu0 }
 0x1c2   : > { %v2453_v47 = vpop.f32.mrf.mxu3 }
 0x1c3   : > { %v2429_v2 = vpop.f32.mrf.mxu1  ;;  %v2454_v8 = vadd.f32 %v2453_v47, %v2441_v34  ;;  %v2618_v34 = vperm.slane %v5489_v59, 3 }
 0x1c5   : > { %v2624_v1 = vadd.f32 %v2616_v20, %v2454_v8 }
 0x1c7   : > { %v2628_v33 = vmax.f32 %v2624_v1, 0.0  ;;  %v2442_v5 = vpop.f32.mrf.mxu2 }
 0x1c9   : > { %v2632_v42 = vpack.c.bf16 %v2628_v33, %v2628_v33 }
 0x1ca   : > { %v2455_v7 = vpop.f32.mrf.mxu3 }
 0x1cb   : > { %2916 = vmatmul.bf16.vlgmr.msrb.gmra.mxu1 %v2632_v42 }
 0x1d8   : > { %v2466_v23 = vpop.f32.mrf.mxu0 }
 0x1d9   : > { %v2467_v3 = vadd.f32 %v2466_v23, %v5464_v27  ;;  %v4367_v27 = vld [vmem:[#allocation12 + $0xc8] sm:$0xff] }
 0x1da   : > { %2940 = vmatpush.bf16.msrb.mxu3 %v4367_v27 }
 0x1db   : > { %v2479_v46 = vpop.f32.mrf.mxu1 }
 0x1dc   : > { %v2480_v18 = vadd.f32 %v2479_v46, %v2467_v3 }
 0x1de   : > { %2941 = vmatpush.bf16.msrb.mxu3 %v4366_v40 }
 0x1df   : > { %v2492_v30 = vpop.f32.mrf.mxu2 }
 0x1e0   : > { %v2468_v36 = vpop.f32.mrf.mxu0  ;;  %v2493_v10 = vadd.f32 %v2492_v30, %v2480_v18 }
 0x1e2   : > { %v2505_v61 = vpop.f32.mrf.mxu3 }
 0x1e3   : > { %v2481_v26 = vpop.f32.mrf.mxu1  ;;  %v2506_v21 = vadd.f32 %v2505_v61, %v2493_v10 }
 0x1e7   : > { %v2494_v58 = vpop.f32.mrf.mxu2 }
 0x1ea   : > { %v2507_v22 = vpop.f32.mrf.mxu3 }
 0x1f8   : > { %v2518_v0 = vpop.f32.mrf.mxu0 }
 0x1f9   : > { %v2519_v37 = vadd.f32 %v2518_v0, %v2506_v21 }
 0x1fb   : > { %v2531_v6 = vpop.f32.mrf.mxu1 }
 0x1fc   : > { %v2532_v38 = vadd.f32 %v2531_v6, %v2519_v37 }
 0x1fe   : > { %v2625_v35 = vadd.f32 %v2617_v32, %v2532_v38 }
 0x1ff   : > { %v2544_v17 = vpop.f32.mrf.mxu2 }
 0x200   : > { %v2629_v63 = vmax.f32 %v2625_v35, 0.0  ;;  %v2520_v50 = vpop.f32.mrf.mxu0  ;;  %v2545_v15 = vadd.f32 %v2544_v17, %v5466_v29 }
 0x202   : > { %v2557_v56 = vpop.f32.mrf.mxu3  ;;  %v2633_v39 = vpack.c.bf16 %v2629_v63, %v2629_v63 }
 0x203   : > { %v2533_v41 = vpop.f32.mrf.mxu1  ;;  %v2558_v16 = vadd.f32 %v2557_v56, %v2545_v15 }
 0x204   : > { %2929 = vmatmul.bf16.vlgmr.msrb.gmra.mxu2 %v2633_v39 }
 0x207   : > { %v2546_v9 = vpop.f32.mrf.mxu2 }
 0x20a   : > { %v2559_v53 = vpop.f32.mrf.mxu3 }
 0x218   : > { %v2570_v28 = vpop.f32.mrf.mxu0 }
 0x219   : > { %v2583_v11 = vpop.f32.mrf.mxu1  ;;  %v2571_v62 = vadd.f32 %v2570_v28, %v2558_v16 }
 0x21b   : > { %v2584_v45 = vadd.f32 %v2583_v11, %v2571_v62 }
 0x220   : > { %v2596_v14 = vpop.f32.mrf.mxu2  ;;  %v2572_v47 = vpop.f32.mrf.mxu0 }
 0x221   : > { %v2597_v19 = vadd.f32 %v2596_v14, %v2584_v45  ;;  %v2609_v24 = vpop.f32.mrf.mxu3  ;;  %v2585_v20 = vpop.f32.mrf.mxu1 }
 0x223   : > { %v2610_v12 = vadd.f32 %v2609_v24, %v2597_v19 }
 0x225   : > { %v2626_v51 = vadd.f32 %v2618_v34, %v2610_v12 }
 0x227   : > { %v2630_v2 = vmax.f32 %v2626_v51, 0.0 }
 0x228   : > { %v2598_v8 = vpop.f32.mrf.mxu2 }
 0x229   : > { %v2634_v49 = vpack.c.bf16 %v2630_v2, %v2630_v2  ;;  %v2611_v1 = vpop.f32.mrf.mxu3 }
 0x22b   : > { %2942 = vmatmul.bf16.vlgmr.msrb.gmra.mxu3 %v2634_v49 }
 0x238   : > { %v2904_v29 = vpop.f32.mrf.mxu0 }
 0x239   : > { %v2905_v5 = vadd.f32 %v4498_v44, %v2904_v29 }
 0x240   : > { %v2906_v33 = vpop.f32.mrf.mxu0 }
 0x248   : > { %v2917_v42 = vpop.f32.mrf.mxu1 }
 0x249   : > { %v2918_v7 = vadd.f32 %v2917_v42, %v2905_v5 }
 0x250   : > { %v2919_v4 = vpop.f32.mrf.mxu1 }
 0x287   : > { %v2930_v59 = vpop.f32.mrf.mxu2 }
 0x288   : > { %v2931_v31 = vadd.f32 %v2930_v59, %v2918_v7 }
 0x28f   : > { %v2932_v54 = vpop.f32.mrf.mxu2 }
 0x2ae   : > { %v2943_v23 = vpop.f32.mrf.mxu3 }
 0x2af   : > { %v2944_v46 = vadd.f32 %v2943_v23, %v2931_v31 }
 0x2b1   : > { %2947 = vst [vmem:[#allocation14] sm:$0xff] %v2944_v46 }
 0x2b6   : > { %v2945_v57 = vpop.f32.mrf.mxu3 }
 0x2b7 PF: > { %s5625_s3 = sadd.s32 4294967295, %s4773_s29   ;;  %s2958_s9 = sshll.u32 %s5531_s7, 4  ;;  %s2959_s9 = int_to_ptr.hbm [resolvable:$true] %s2958_s9 }
 0x2b8   : > { %p4434_p3 = scmp.eq.s32.totalorder %s5625_s3, 1  ;;  %s4788_s13 = smov [#allocation14]  }
 0x2b9   : > { %s2956_s17 = sshll.u32 %s4788_s13, 4  ;;  %s2957_s17 = int_to_ptr.vmem [resolvable:$true] %s2956_s17 }
 0x2ba   : > { %4400 = dma.vmem_to_hbm [thread:$0]  (%p4434_p3), %s2957_s17, 128, %s2959_s9, [#allocation5]  }
 0x2bb   : > { %4748 = dma.done.wait (%p4434_p3), [#allocation5], 128  }
 0x2bc   : > { %4750 = vsyncadd (%p4434_p3), [#allocation5], 4294967168 }
 0x2bd PF: > { %s24_s29 = sadd.s32 1, %s4773_s29   ;;  %s5626_s24 = smov %s4757_s25 }
 0x2be   : > { %p21_p4 = scmp.ge.s32.totalorder %s24_s29, 4   ;;  %s5627_s25 = smov %s4761_s26 }
 0x2bf   : > { %s5628_s26 = smov %s4923_s20  ;;  %s5629_s27 = smov %s4769_s28 }
 0x2c0   : > { %s5630_s28 = smov %s5632_s11  ;;  %23 = sbr.rel (!%p21_p4) target bundleno = 12 (0xc), region = 115 }
 0x2c5   :  { %2972 = vsyncpa [#allocation4], 1 }
 0x2c6   :  { %2974 = vsyncpa [#allocation4 + $0x1], 1 }
 0x2c7   :  { %2975 = vsyncpa [#allocation7], 1 }
 0x2c8   :  { %2976 = vsyncpa [#allocation10], 1 }
 0x2c9   :  { %2977 = vsyncpa [#allocation13], 1 }
 0x2ca   :  { %2978 = vsyncpa [#allocation5], 1 }
 0x2cb   :  { %2980 = vsyncpa [#allocation5 + $0x1], 1 }

</bundles_post_ra>
